<compile_context>
chip_gen: v5e
topology: v5e:2x2
jax: 0.10.0
libtpu: 0.0.40
codegen_flags: <defaults>
</compile_context>

<pallas_src>
import jax
import jax.numpy as jnp
from jax import lax
from jax.experimental import pallas as pl
from jax.experimental.pallas import tpu as pltpu

# ---------------------------------------------------------------- config ----
B, S = 2, 8            # batch, sequence
H = 32                 # hidden size (stands in for 768)
NH = 2                 # attention heads
DH = H // NH           # head dim
INTER = 64             # FFN intermediate size
LAYERS = 2             # encoder layers
VOCAB = 50
MAXPOS = 16
EPS = 1e-12            # BERT LayerNorm eps
SCALE = 1.0 / (DH ** 0.5)
GELU_C = 0.7978845608028654  # sqrt(2/pi)
LANES = 128


# ------------------------------------------------------- packed weight map --
def _round8(n):
    return ((n + 7) // 8) * 8


def _build_layout(entries):
    layout, off = {}, 0
    for name, r, c in entries:
        layout[name] = (off, r, c)
        off += _round8(r)
    return layout, off


_MAT_ENTRIES = (
    [("word_emb", VOCAB, H), ("pos_emb", MAXPOS, H), ("type_emb", 2, H)]
    + [(f"{n}{l}", r, c)
       for l in range(LAYERS)
       for n, r, c in (("wqkv", H, 3 * H), ("wo", H, H),
                       ("w1", H, INTER), ("w2", INTER, H))])

_VEC_ENTRIES = (
    [("emb_ln_g", 1, H), ("emb_ln_b", 1, H)]
    + [(f"{n}{l}", 1, c)
       for l in range(LAYERS)
       for n, c in (("bqkv", 3 * H), ("bo", H), ("ln1_g", H), ("ln1_b", H),
                    ("b1", INTER), ("b2", H), ("ln2_g", H), ("ln2_b", H))])

_MAT_LAYOUT, _MAT_ROWS = _build_layout(_MAT_ENTRIES)   # bf16 matrices
_VEC_LAYOUT, _VEC_ROWS = _build_layout(_VEC_ENTRIES)   # f32 biases / LN params


# ----------------------------------------------------------- fused kernel ---
def _mat(ref, name, rows=None):
    """Static slice of a packed bf16 matrix (zero runtime indexing cost)."""
    off, r, c = _MAT_LAYOUT[name]
    r = r if rows is None else rows
    return ref[pl.ds(off, r), :][:, :c]


def _vec(ref, name):
    """Static slice of a packed f32 bias / LayerNorm vector -> [1, c]."""
    off, _, c = _VEC_LAYOUT[name]
    return ref[pl.ds(off, 1), :][:, :c]


def _bert_fused_kernel(ids_ref,     # VMEM int32 [B, S]
                       msk_ref,     # VMEM int32 [B, S]
                       pos_ref,     # VMEM int32 [B, 1]
                       wmat_ref,    # VMEM bf16  [_MAT_ROWS, 128]  (packed mats)
                       wvec_ref,    # VMEM f32   [_VEC_ROWS, 128]  (packed vecs)
                       out_ref):    # VMEM f32   [B, H]
    """Entire encoder forward (embeddings -> layers -> mask_pos gather)."""

    def layer_norm(h, g, b):
        mu = jnp.mean(h, axis=-1, keepdims=True)
        d = h - mu
        var = jnp.mean(d * d, axis=-1, keepdims=True)
        return d * lax.rsqrt(var + EPS) * g + b

    f32 = jnp.float32
    bf16 = jnp.bfloat16

    # --- embeddings: one-hot gather on the MXU + pos/type add, all in VMEM ---
    eq = (lax.broadcasted_iota(jnp.int32, (B, S, VOCAB), 2)
          == ids_ref[...][:, :, None])
    one_hot = jnp.where(eq, f32(1.0), f32(0.0)).reshape(B * S, VOCAB).astype(bf16)
    emb = jnp.dot(one_hot, _mat(wmat_ref, "word_emb"),
                  preferred_element_type=f32)                       # [B*S, H]
    pos_tab = _mat(wmat_ref, "pos_emb", rows=S).astype(f32)         # [S, H]
    type_row = _mat(wmat_ref, "type_emb", rows=1).astype(f32)       # [1, H]
    emb = emb + jnp.concatenate([pos_tab] * B, axis=0) + type_row
    x = layer_norm(emb, _vec(wvec_ref, "emb_ln_g"), _vec(wvec_ref, "emb_ln_b"))

    # --- additive attention mask, built once and fully broadcast (hoisted) ---
    neg = (f32(1.0) - msk_ref[...].astype(f32)) * f32(-10000.0)     # [B, S]
    neg_bias = jnp.broadcast_to(neg.reshape(B, 1, S), (B, S, S))    # [B, S, S]

    for l in range(LAYERS):
        # --- self attention: fused QKV projection (bf16 operands, f32 acc) ---
        qkv = jnp.dot(x.astype(bf16), _mat(wmat_ref, f"wqkv{l}"),
                      preferred_element_type=f32) + _vec(wvec_ref, f"bqkv{l}")
        qkv3 = qkv.reshape(B, S, 3 * H)
        ctx_heads = []
        for h in range(NH):
            q = qkv3[:, :, h * DH:(h + 1) * DH].astype(bf16)
            k = qkv3[:, :, H + h * DH:H + (h + 1) * DH].astype(bf16)
            v = qkv3[:, :, 2 * H + h * DH:2 * H + (h + 1) * DH].astype(bf16)
            s = jnp.einsum("bqd,bkd->bqk", q, k,
                           preferred_element_type=f32) * f32(SCALE) + neg_bias
            s = s - jnp.max(s, axis=-1, keepdims=True)
            p = jnp.exp(s)
            p = p * pl.reciprocal(jnp.sum(p, axis=-1, keepdims=True), approx=True)
            ctx_heads.append(jnp.einsum("bqk,bkd->bqd", p.astype(bf16), v,
                                        preferred_element_type=f32))
        ctx = jnp.concatenate(ctx_heads, axis=-1).reshape(B * S, H)  # head merge
        attn = jnp.dot(ctx.astype(bf16), _mat(wmat_ref, f"wo{l}"),
                       preferred_element_type=f32) + _vec(wvec_ref, f"bo{l}")
        x = layer_norm(attn + x,
                       _vec(wvec_ref, f"ln1_g{l}"), _vec(wvec_ref, f"ln1_b{l}"))

        # --- feed forward (bf16 matmuls, f32 GELU) ---
        ff = jnp.dot(x.astype(bf16), _mat(wmat_ref, f"w1{l}"),
                     preferred_element_type=f32) + _vec(wvec_ref, f"b1{l}")
        # TODO(synk): HF BERT uses erf-GELU; tanh approximation kept here.
        ff = 0.5 * ff * (1.0 + jnp.tanh(f32(GELU_C)
                                        * (ff + 0.044715 * ff * ff * ff)))
        ff = jnp.dot(ff.astype(bf16), _mat(wmat_ref, f"w2{l}"),
                     preferred_element_type=f32) + _vec(wvec_ref, f"b2{l}")
        resid = ff + x                                               # pre-LN2

        if l < LAYERS - 1:
            x = layer_norm(resid, _vec(wvec_ref, f"ln2_g{l}"),
                           _vec(wvec_ref, f"ln2_b{l}"))
        else:
            # --- outputs[0][arange(B), mask_pos]: in-register row select,   ---
            # --- final LN on just B rows, single full-block output store.   ---
            p = jnp.clip(pos_ref[...], 0, S - 1)                     # [B, 1]
            sel = jnp.where(lax.broadcasted_iota(jnp.int32, (B, S), 1) == p,
                            f32(1.0), f32(0.0))                      # [B, S]
            gathered = jnp.sum(resid.reshape(B, S, H) * sel[:, :, None],
                               axis=1)                               # [B, H]
            out_ref[...] = layer_norm(gathered,
                                      _vec(wvec_ref, f"ln2_g{l}"),
                                      _vec(wvec_ref, f"ln2_b{l}"))


# ----------------------------------------------------------- parameters -----
def init_params(key):
    def nrm(k, shape):
        return (0.02 * jax.random.normal(k, shape)).astype(jnp.float32)

    keys = jax.random.split(key, 3 + 4 * LAYERS)
    p = {
        "word_emb": nrm(keys[0], (VOCAB, H)),
        "pos_emb": nrm(keys[1], (MAXPOS, H)),
        "type_emb": nrm(keys[2], (2, H)),
        "emb_ln_g": jnp.ones((1, H), jnp.float32),
        "emb_ln_b": jnp.zeros((1, H), jnp.float32),
    }
    ki = 3
    for l in range(LAYERS):
        p[f"wqkv{l}"] = nrm(keys[ki + 0], (H, 3 * H))   # fused Wq|Wk|Wv
        p[f"wo{l}"] = nrm(keys[ki + 1], (H, H))
        p[f"w1{l}"] = nrm(keys[ki + 2], (H, INTER))
        p[f"w2{l}"] = nrm(keys[ki + 3], (INTER, H))
        ki += 4
        p[f"bqkv{l}"] = jnp.zeros((1, 3 * H), jnp.float32)
        p[f"bo{l}"] = jnp.zeros((1, H), jnp.float32)
        p[f"ln1_g{l}"] = jnp.ones((1, H), jnp.float32)
        p[f"ln1_b{l}"] = jnp.zeros((1, H), jnp.float32)
        p[f"b1{l}"] = jnp.zeros((1, INTER), jnp.float32)
        p[f"b2{l}"] = jnp.zeros((1, H), jnp.float32)
        p[f"ln2_g{l}"] = jnp.ones((1, H), jnp.float32)
        p[f"ln2_b{l}"] = jnp.zeros((1, H), jnp.float32)
    return p


def pack_params(params):
    """Pack all weights into two flat lane-padded buffers (runs once)."""
    wmat = jnp.zeros((_MAT_ROWS, LANES), jnp.bfloat16)
    for name, (off, r, c) in _MAT_LAYOUT.items():
        wmat = wmat.at[off:off + r, :c].set(params[name].astype(jnp.bfloat16))
    wvec = jnp.zeros((_VEC_ROWS, LANES), jnp.float32)
    for name, (off, r, c) in _VEC_LAYOUT.items():
        wvec = wvec.at[off:off + r, :c].set(params[name].astype(jnp.float32))
    return wmat, wvec


# -------------------------------------------------------------- forward -----
def bert_sentence_encoder_prompt(wmat, wvec, input_ids, attn_mask, mask_pos):
    """Equivalent of BERTSentenceEncoderPrompt.forward -> [B, H]."""
    ids = input_ids.astype(jnp.int32)
    msk = attn_mask.astype(jnp.int32)
    pos = mask_pos.astype(jnp.int32).reshape(B, 1)
    return pl.pallas_call(
        _bert_fused_kernel,
        out_shape=jax.ShapeDtypeStruct((B, H), jnp.float32),
        in_specs=[pl.BlockSpec(memory_space=pltpu.MemorySpace.VMEM)] * 5,
        out_specs=pl.BlockSpec(memory_space=pltpu.MemorySpace.VMEM),
        compiler_params=pltpu.CompilerParams(vmem_limit_bytes=8 * 1024 * 1024),
    )(ids, msk, pos, wmat, wvec)


# ------------------------------------------------------------------ main ----
if __name__ == "__main__":
    key = jax.random.PRNGKey(0)
    kp, ki = jax.random.split(key)

    params = init_params(kp)
    wmat, wvec = pack_params(params)                 # packed once, outside jit

    input_ids = jax.random.randint(ki, (B, S), 0, VOCAB, dtype=jnp.int32)
    attn_mask = jnp.array([[1, 1, 1, 1, 1, 1, 1, 1],
                           [1, 1, 1, 1, 1, 0, 0, 0]], dtype=jnp.int32)
    mask_pos = jnp.array([3, 2], dtype=jnp.int32)

    fwd = jax.jit(bert_sentence_encoder_prompt)
    out = fwd(wmat, wvec, input_ids, attn_mask, mask_pos)
    out = jax.block_until_ready(out)

    assert out.shape == (B, H) and out.dtype == jnp.float32
    assert bool(jnp.all(jnp.isfinite(out)))
    print("KERNEL_OK")
</pallas_src>

<mosaic_0001>
module attributes {stable_mosaic.version = 11 : i64} {
  func.func @_bert_fused_kernel(%arg0: memref<2x8xi32, #tpu.memory_space<vmem>>, %arg1: memref<2x8xi32, #tpu.memory_space<vmem>>, %arg2: memref<2x1xi32, #tpu.memory_space<vmem>>, %arg3: memref<400x128xbf16, #tpu.memory_space<vmem>>, %arg4: memref<144x128xf32, #tpu.memory_space<vmem>>, %arg5: memref<2x32xf32, #tpu.memory_space<vmem>>) attributes {dimension_semantics = [], scalar_prefetch = 0 : i64, scratch_operands = 0 : i64, tpu.core_type = #tpu.core_type<tc>} {
    %0 = tpu.iota {dimensions = array<i32: 2>} : vector<2x8x50xi32>
    %c0 = arith.constant 0 : index
    %c0_0 = arith.constant 0 : index
    %1 = vector.load %arg0[%c0, %c0_0] : memref<2x8xi32, #tpu.memory_space<vmem>>, vector<2x8xi32>
    %2 = vector.shape_cast %1 : vector<2x8xi32> to vector<2x8x1xi32>
    %3 = vector.broadcast %2 : vector<2x8x1xi32> to vector<2x8x50xi32>
    %4 = arith.cmpi eq, %0, %3 : vector<2x8x50xi32>
    %cst = arith.constant 1.000000e+00 : f32
    %cst_1 = arith.constant 0.000000e+00 : f32
    %5 = vector.broadcast %cst : f32 to vector<2x8x50xf32>
    %6 = vector.broadcast %cst_1 : f32 to vector<2x8x50xf32>
    %7 = arith.select %4, %5, %6 : vector<2x8x50xi1>, vector<2x8x50xf32>
    %8 = vector.shape_cast %7 : vector<2x8x50xf32> to vector<16x50xf32>
    %9 = arith.truncf %8 : vector<16x50xf32> to vector<16x50xbf16>
    %c0_2 = arith.constant 0 : index
    %c0_3 = arith.constant 0 : index
    %10 = vector.load %arg3[%c0_2, %c0_3] : memref<400x128xbf16, #tpu.memory_space<vmem>>, vector<50x128xbf16>
    %11 = vector.extract_strided_slice %10 {offsets = [0, 0], sizes = [50, 32], strides = [1, 1]} : vector<50x128xbf16> to vector<50x32xbf16>
    %cst_4 = arith.constant dense<0.000000e+00> : vector<16x32xf32>
    %12 = tpu.matmul %9, %11, %cst_4 {dimension_numbers = #tpu.dot_dimension_numbers<[1], [0], [0], [1], [0, 0, 1, 1], [], []>} : vector<16x50xbf16>, vector<50x32xbf16>, vector<16x32xf32> -> vector<16x32xf32>
    %c56 = arith.constant 56 : index
    %c0_5 = arith.constant 0 : index
    %13 = vector.load %arg3[%c56, %c0_5] : memref<400x128xbf16, #tpu.memory_space<vmem>>, vector<8x128xbf16>
    %14 = vector.extract_strided_slice %13 {offsets = [0, 0], sizes = [8, 32], strides = [1, 1]} : vector<8x128xbf16> to vector<8x32xbf16>
    %15 = arith.extf %14 : vector<8x32xbf16> to vector<8x32xf32>
    %c72 = arith.constant 72 : index
    %c0_6 = arith.constant 0 : index
    %16 = vector.load %arg3[%c72, %c0_6] : memref<400x128xbf16, #tpu.memory_space<vmem>>, vector<1x128xbf16>
    %17 = vector.extract_strided_slice %16 {offsets = [0, 0], sizes = [1, 32], strides = [1, 1]} : vector<1x128xbf16> to vector<1x32xbf16>
    %18 = arith.extf %17 : vector<1x32xbf16> to vector<1x32xf32>
    %19 = tpu.concatenate %15, %15 in 0 : vector<8x32xf32>, vector<8x32xf32> -> vector<16x32xf32>
    %20 = arith.addf %12, %19 : vector<16x32xf32>
    %21 = vector.broadcast %18 : vector<1x32xf32> to vector<16x32xf32>
    %22 = arith.addf %20, %21 : vector<16x32xf32>
    %c0_7 = arith.constant 0 : index
    %c0_8 = arith.constant 0 : index
    %23 = vector.load %arg4[%c0_7, %c0_8] : memref<144x128xf32, #tpu.memory_space<vmem>>, vector<1x128xf32>
    %24 = vector.extract_strided_slice %23 {offsets = [0, 0], sizes = [1, 32], strides = [1, 1]} : vector<1x128xf32> to vector<1x32xf32>
    %c8 = arith.constant 8 : index
    %c0_9 = arith.constant 0 : index
    %25 = vector.load %arg4[%c8, %c0_9] : memref<144x128xf32, #tpu.memory_space<vmem>>, vector<1x128xf32>
    %26 = vector.extract_strided_slice %25 {offsets = [0, 0], sizes = [1, 32], strides = [1, 1]} : vector<1x128xf32> to vector<1x32xf32>
    %cst_10 = arith.constant dense<0.000000e+00> : vector<16xf32>
    %27 = vector.multi_reduction <add>, %22, %cst_10 [1] : vector<16x32xf32> to vector<16xf32>
    %28 = vector.shape_cast %27 : vector<16xf32> to vector<16x1xf32>
    %cst_11 = arith.constant 3.200000e+01 : f32
    %29 = vector.broadcast %cst_11 : f32 to vector<16x1xf32>
    %30 = arith.divf %28, %29 : vector<16x1xf32>
    %31 = vector.broadcast %30 : vector<16x1xf32> to vector<16x32xf32>
    %32 = arith.subf %22, %31 : vector<16x32xf32>
    %33 = arith.mulf %32, %32 : vector<16x32xf32>
    %cst_12 = arith.constant dense<0.000000e+00> : vector<16xf32>
    %34 = vector.multi_reduction <add>, %33, %cst_12 [1] : vector<16x32xf32> to vector<16xf32>
    %35 = vector.shape_cast %34 : vector<16xf32> to vector<16x1xf32>
    %cst_13 = arith.constant 3.200000e+01 : f32
    %36 = vector.broadcast %cst_13 : f32 to vector<16x1xf32>
    %37 = arith.divf %35, %36 : vector<16x1xf32>
    %cst_14 = arith.constant 9.99999996E-13 : f32
    %38 = vector.broadcast %cst_14 : f32 to vector<16x1xf32>
    %39 = arith.addf %37, %38 : vector<16x1xf32>
    %40 = math.rsqrt %39 : vector<16x1xf32>
    %41 = vector.broadcast %40 : vector<16x1xf32> to vector<16x32xf32>
    %42 = arith.mulf %32, %41 : vector<16x32xf32>
    %43 = vector.broadcast %24 : vector<1x32xf32> to vector<16x32xf32>
    %44 = arith.mulf %42, %43 : vector<16x32xf32>
    %45 = vector.broadcast %26 : vector<1x32xf32> to vector<16x32xf32>
    %46 = arith.addf %44, %45 : vector<16x32xf32>
    %c0_15 = arith.constant 0 : index
    %c0_16 = arith.constant 0 : index
    %47 = vector.load %arg1[%c0_15, %c0_16] : memref<2x8xi32, #tpu.memory_space<vmem>>, vector<2x8xi32>
    %48 = arith.sitofp %47 : vector<2x8xi32> to vector<2x8xf32>
    %cst_17 = arith.constant 1.000000e+00 : f32
    %49 = vector.broadcast %cst_17 : f32 to vector<2x8xf32>
    %50 = arith.subf %49, %48 : vector<2x8xf32>
    %cst_18 = arith.constant -1.000000e+04 : f32
    %51 = vector.broadcast %cst_18 : f32 to vector<2x8xf32>
    %52 = arith.mulf %50, %51 : vector<2x8xf32>
    %53 = vector.shape_cast %52 : vector<2x8xf32> to vector<2x1x8xf32>
    %54 = vector.shape_cast %53 : vector<2x1x8xf32> to vector<2x1x8xf32>
    %55 = vector.broadcast %54 : vector<2x1x8xf32> to vector<2x8x8xf32>
    %56 = arith.truncf %46 : vector<16x32xf32> to vector<16x32xbf16>
    %c80 = arith.constant 80 : index
    %c0_19 = arith.constant 0 : index
    %57 = vector.load %arg3[%c80, %c0_19] : memref<400x128xbf16, #tpu.memory_space<vmem>>, vector<32x128xbf16>
    %58 = vector.extract_strided_slice %57 {offsets = [0, 0], sizes = [32, 96], strides = [1, 1]} : vector<32x128xbf16> to vector<32x96xbf16>
    %cst_20 = arith.constant dense<0.000000e+00> : vector<16x96xf32>
    %59 = tpu.matmul %56, %58, %cst_20 {dimension_numbers = #tpu.dot_dimension_numbers<[1], [0], [0], [1], [0, 0, 1, 1], [], []>} : vector<16x32xbf16>, vector<32x96xbf16>, vector<16x96xf32> -> vector<16x96xf32>
    %c16 = arith.constant 16 : index
    %c0_21 = arith.constant 0 : index
    %60 = vector.load %arg4[%c16, %c0_21] : memref<144x128xf32, #tpu.memory_space<vmem>>, vector<1x128xf32>
    %61 = vector.extract_strided_slice %60 {offsets = [0, 0], sizes = [1, 96], strides = [1, 1]} : vector<1x128xf32> to vector<1x96xf32>
    %62 = vector.broadcast %61 : vector<1x96xf32> to vector<16x96xf32>
    %63 = arith.addf %59, %62 : vector<16x96xf32>
    %64 = vector.shape_cast %63 : vector<16x96xf32> to vector<2x8x96xf32>
    %65 = vector.extract_strided_slice %64 {offsets = [0, 0, 0], sizes = [2, 8, 16], strides = [1, 1, 1]} : vector<2x8x96xf32> to vector<2x8x16xf32>
    %66 = arith.truncf %65 : vector<2x8x16xf32> to vector<2x8x16xbf16>
    %67 = vector.extract_strided_slice %64 {offsets = [0, 0, 32], sizes = [2, 8, 16], strides = [1, 1, 1]} : vector<2x8x96xf32> to vector<2x8x16xf32>
    %68 = arith.truncf %67 : vector<2x8x16xf32> to vector<2x8x16xbf16>
    %69 = vector.extract_strided_slice %64 {offsets = [0, 0, 64], sizes = [2, 8, 16], strides = [1, 1, 1]} : vector<2x8x96xf32> to vector<2x8x16xf32>
    %70 = arith.truncf %69 : vector<2x8x16xf32> to vector<2x8x16xbf16>
    "tpu.trace_start"() <{level = 10 : i32, message = "bqd,bkd->bqk"}> : () -> ()
    %cst_22 = arith.constant dense<0.000000e+00> : vector<2x8x8xf32>
    %71 = tpu.matmul %66, %68, %cst_22 {dimension_numbers = #tpu.dot_dimension_numbers<[2], [2], [1], [1], [0, 0, 0, 1, 1, 1], [0], [0]>} : vector<2x8x16xbf16>, vector<2x8x16xbf16>, vector<2x8x8xf32> -> vector<2x8x8xf32>
    "tpu.trace_stop"() : () -> ()
    %cst_23 = arith.constant 2.500000e-01 : f32
    %72 = vector.broadcast %cst_23 : f32 to vector<2x8x8xf32>
    %73 = arith.mulf %71, %72 : vector<2x8x8xf32>
    %74 = arith.addf %73, %55 : vector<2x8x8xf32>
    %cst_24 = arith.constant dense<0xFF800000> : vector<2x8xf32>
    %75 = vector.multi_reduction <maximumf>, %74, %cst_24 [2] : vector<2x8x8xf32> to vector<2x8xf32>
    %76 = vector.shape_cast %75 : vector<2x8xf32> to vector<2x8x1xf32>
    %77 = vector.broadcast %76 : vector<2x8x1xf32> to vector<2x8x8xf32>
    %78 = arith.subf %74, %77 : vector<2x8x8xf32>
    %79 = math.exp %78 : vector<2x8x8xf32>
    %cst_25 = arith.constant dense<0.000000e+00> : vector<2x8xf32>
    %80 = vector.multi_reduction <add>, %79, %cst_25 [2] : vector<2x8x8xf32> to vector<2x8xf32>
    %81 = vector.shape_cast %80 : vector<2x8xf32> to vector<2x8x1xf32>
    %82 = tpu.reciprocal %81 {approx = true} : vector<2x8x1xf32> -> vector<2x8x1xf32>
    %83 = vector.broadcast %82 : vector<2x8x1xf32> to vector<2x8x8xf32>
    %84 = arith.mulf %79, %83 : vector<2x8x8xf32>
    %85 = arith.truncf %84 : vector<2x8x8xf32> to vector<2x8x8xbf16>
    "tpu.trace_start"() <{level = 10 : i32, message = "bqk,bkd->bqd"}> : () -> ()
    %cst_26 = arith.constant dense<0.000000e+00> : vector<2x8x16xf32>
    %86 = tpu.matmul %85, %70, %cst_26 {dimension_numbers = #tpu.dot_dimension_numbers<[2], [1], [1], [2], [0, 0, 0, 1, 1, 2], [0], [0]>} : vector<2x8x8xbf16>, vector<2x8x16xbf16>, vector<2x8x16xf32> -> vector<2x8x16xf32>
    "tpu.trace_stop"() : () -> ()
    %87 = vector.extract_strided_slice %64 {offsets = [0, 0, 16], sizes = [2, 8, 16], strides = [1, 1, 1]} : vector<2x8x96xf32> to vector<2x8x16xf32>
    %88 = arith.truncf %87 : vector<2x8x16xf32> to vector<2x8x16xbf16>
    %89 = vector.extract_strided_slice %64 {offsets = [0, 0, 48], sizes = [2, 8, 16], strides = [1, 1, 1]} : vector<2x8x96xf32> to vector<2x8x16xf32>
    %90 = arith.truncf %89 : vector<2x8x16xf32> to vector<2x8x16xbf16>
    %91 = vector.extract_strided_slice %64 {offsets = [0, 0, 80], sizes = [2, 8, 16], strides = [1, 1, 1]} : vector<2x8x96xf32> to vector<2x8x16xf32>
    %92 = arith.truncf %91 : vector<2x8x16xf32> to vector<2x8x16xbf16>
    "tpu.trace_start"() <{level = 10 : i32, message = "bqd,bkd->bqk"}> : () -> ()
    %cst_27 = arith.constant dense<0.000000e+00> : vector<2x8x8xf32>
    %93 = tpu.matmul %88, %90, %cst_27 {dimension_numbers = #tpu.dot_dimension_numbers<[2], [2], [1], [1], [0, 0, 0, 1, 1, 1], [0], [0]>} : vector<2x8x16xbf16>, vector<2x8x16xbf16>, vector<2x8x8xf32> -> vector<2x8x8xf32>
    "tpu.trace_stop"() : () -> ()
    %cst_28 = arith.constant 2.500000e-01 : f32
    %94 = vector.broadcast %cst_28 : f32 to vector<2x8x8xf32>
    %95 = arith.mulf %93, %94 : vector<2x8x8xf32>
    %96 = arith.addf %95, %55 : vector<2x8x8xf32>
    %cst_29 = arith.constant dense<0xFF800000> : vector<2x8xf32>
    %97 = vector.multi_reduction <maximumf>, %96, %cst_29 [2] : vector<2x8x8xf32> to vector<2x8xf32>
    %98 = vector.shape_cast %97 : vector<2x8xf32> to vector<2x8x1xf32>
    %99 = vector.broadcast %98 : vector<2x8x1xf32> to vector<2x8x8xf32>
    %100 = arith.subf %96, %99 : vector<2x8x8xf32>
    %101 = math.exp %100 : vector<2x8x8xf32>
    %cst_30 = arith.constant dense<0.000000e+00> : vector<2x8xf32>
    %102 = vector.multi_reduction <add>, %101, %cst_30 [2] : vector<2x8x8xf32> to vector<2x8xf32>
    %103 = vector.shape_cast %102 : vector<2x8xf32> to vector<2x8x1xf32>
    %104 = tpu.reciprocal %103 {approx = true} : vector<2x8x1xf32> -> vector<2x8x1xf32>
    %105 = vector.broadcast %104 : vector<2x8x1xf32> to vector<2x8x8xf32>
    %106 = arith.mulf %101, %105 : vector<2x8x8xf32>
    %107 = arith.truncf %106 : vector<2x8x8xf32> to vector<2x8x8xbf16>
    "tpu.trace_start"() <{level = 10 : i32, message = "bqk,bkd->bqd"}> : () -> ()
    %cst_31 = arith.constant dense<0.000000e+00> : vector<2x8x16xf32>
    %108 = tpu.matmul %107, %92, %cst_31 {dimension_numbers = #tpu.dot_dimension_numbers<[2], [1], [1], [2], [0, 0, 0, 1, 1, 2], [0], [0]>} : vector<2x8x8xbf16>, vector<2x8x16xbf16>, vector<2x8x16xf32> -> vector<2x8x16xf32>
    "tpu.trace_stop"() : () -> ()
    %109 = tpu.concatenate %86, %108 in 2 : vector<2x8x16xf32>, vector<2x8x16xf32> -> vector<2x8x32xf32>
    %110 = vector.shape_cast %109 : vector<2x8x32xf32> to vector<16x32xf32>
    %111 = arith.truncf %110 : vector<16x32xf32> to vector<16x32xbf16>
    %c112 = arith.constant 112 : index
    %c0_32 = arith.constant 0 : index
    %112 = vector.load %arg3[%c112, %c0_32] : memref<400x128xbf16, #tpu.memory_space<vmem>>, vector<32x128xbf16>
    %113 = vector.extract_strided_slice %112 {offsets = [0, 0], sizes = [32, 32], strides = [1, 1]} : vector<32x128xbf16> to vector<32x32xbf16>
    %cst_33 = arith.constant dense<0.000000e+00> : vector<16x32xf32>
    %114 = tpu.matmul %111, %113, %cst_33 {dimension_numbers = #tpu.dot_dimension_numbers<[1], [0], [0], [1], [0, 0, 1, 1], [], []>} : vector<16x32xbf16>, vector<32x32xbf16>, vector<16x32xf32> -> vector<16x32xf32>
    %c24 = arith.constant 24 : index
    %c0_34 = arith.constant 0 : index
    %115 = vector.load %arg4[%c24, %c0_34] : memref<144x128xf32, #tpu.memory_space<vmem>>, vector<1x128xf32>
    %116 = vector.extract_strided_slice %115 {offsets = [0, 0], sizes = [1, 32], strides = [1, 1]} : vector<1x128xf32> to vector<1x32xf32>
    %117 = vector.broadcast %116 : vector<1x32xf32> to vector<16x32xf32>
    %118 = arith.addf %114, %117 : vector<16x32xf32>
    %119 = arith.addf %118, %46 : vector<16x32xf32>
    %c32 = arith.constant 32 : index
    %c0_35 = arith.constant 0 : index
    %120 = vector.load %arg4[%c32, %c0_35] : memref<144x128xf32, #tpu.memory_space<vmem>>, vector<1x128xf32>
    %121 = vector.extract_strided_slice %120 {offsets = [0, 0], sizes = [1, 32], strides = [1, 1]} : vector<1x128xf32> to vector<1x32xf32>
    %c40 = arith.constant 40 : index
    %c0_36 = arith.constant 0 : index
    %122 = vector.load %arg4[%c40, %c0_36] : memref<144x128xf32, #tpu.memory_space<vmem>>, vector<1x128xf32>
    %123 = vector.extract_strided_slice %122 {offsets = [0, 0], sizes = [1, 32], strides = [1, 1]} : vector<1x128xf32> to vector<1x32xf32>
    %cst_37 = arith.constant dense<0.000000e+00> : vector<16xf32>
    %124 = vector.multi_reduction <add>, %119, %cst_37 [1] : vector<16x32xf32> to vector<16xf32>
    %125 = vector.shape_cast %124 : vector<16xf32> to vector<16x1xf32>
    %cst_38 = arith.constant 3.200000e+01 : f32
    %126 = vector.broadcast %cst_38 : f32 to vector<16x1xf32>
    %127 = arith.divf %125, %126 : vector<16x1xf32>
    %128 = vector.broadcast %127 : vector<16x1xf32> to vector<16x32xf32>
    %129 = arith.subf %119, %128 : vector<16x32xf32>
    %130 = arith.mulf %129, %129 : vector<16x32xf32>
    %cst_39 = arith.constant dense<0.000000e+00> : vector<16xf32>
    %131 = vector.multi_reduction <add>, %130, %cst_39 [1] : vector<16x32xf32> to vector<16xf32>
    %132 = vector.shape_cast %131 : vector<16xf32> to vector<16x1xf32>
    %cst_40 = arith.constant 3.200000e+01 : f32
    %133 = vector.broadcast %cst_40 : f32 to vector<16x1xf32>
    %134 = arith.divf %132, %133 : vector<16x1xf32>
    %cst_41 = arith.constant 9.99999996E-13 : f32
    %135 = vector.broadcast %cst_41 : f32 to vector<16x1xf32>
    %136 = arith.addf %134, %135 : vector<16x1xf32>
    %137 = math.rsqrt %136 : vector<16x1xf32>
    %138 = vector.broadcast %137 : vector<16x1xf32> to vector<16x32xf32>
    %139 = arith.mulf %129, %138 : vector<16x32xf32>
    %140 = vector.broadcast %121 : vector<1x32xf32> to vector<16x32xf32>
    %141 = arith.mulf %139, %140 : vector<16x32xf32>
    %142 = vector.broadcast %123 : vector<1x32xf32> to vector<16x32xf32>
    %143 = arith.addf %141, %142 : vector<16x32xf32>
    %144 = arith.truncf %143 : vector<16x32xf32> to vector<16x32xbf16>
    %c144 = arith.constant 144 : index
    %c0_42 = arith.constant 0 : index
    %145 = vector.load %arg3[%c144, %c0_42] : memref<400x128xbf16, #tpu.memory_space<vmem>>, vector<32x128xbf16>
    %146 = vector.extract_strided_slice %145 {offsets = [0, 0], sizes = [32, 64], strides = [1, 1]} : vector<32x128xbf16> to vector<32x64xbf16>
    %cst_43 = arith.constant dense<0.000000e+00> : vector<16x64xf32>
    %147 = tpu.matmul %144, %146, %cst_43 {dimension_numbers = #tpu.dot_dimension_numbers<[1], [0], [0], [1], [0, 0, 1, 1], [], []>} : vector<16x32xbf16>, vector<32x64xbf16>, vector<16x64xf32> -> vector<16x64xf32>
    %c48 = arith.constant 48 : index
    %c0_44 = arith.constant 0 : index
    %148 = vector.load %arg4[%c48, %c0_44] : memref<144x128xf32, #tpu.memory_space<vmem>>, vector<1x128xf32>
    %149 = vector.extract_strided_slice %148 {offsets = [0, 0], sizes = [1, 64], strides = [1, 1]} : vector<1x128xf32> to vector<1x64xf32>
    %150 = vector.broadcast %149 : vector<1x64xf32> to vector<16x64xf32>
    %151 = arith.addf %147, %150 : vector<16x64xf32>
    %cst_45 = arith.constant 5.000000e-01 : f32
    %152 = vector.broadcast %cst_45 : f32 to vector<16x64xf32>
    %153 = arith.mulf %152, %151 : vector<16x64xf32>
    %cst_46 = arith.constant 4.471500e-02 : f32
    %154 = vector.broadcast %cst_46 : f32 to vector<16x64xf32>
    %155 = arith.mulf %154, %151 : vector<16x64xf32>
    %156 = arith.mulf %155, %151 : vector<16x64xf32>
    %157 = arith.mulf %156, %151 : vector<16x64xf32>
    %158 = arith.addf %151, %157 : vector<16x64xf32>
    %cst_47 = arith.constant 0.797884583 : f32
    %159 = vector.broadcast %cst_47 : f32 to vector<16x64xf32>
    %160 = arith.mulf %159, %158 : vector<16x64xf32>
    %161 = math.tanh %160 : vector<16x64xf32>
    %cst_48 = arith.constant 1.000000e+00 : f32
    %162 = vector.broadcast %cst_48 : f32 to vector<16x64xf32>
    %163 = arith.addf %162, %161 : vector<16x64xf32>
    %164 = arith.mulf %153, %163 : vector<16x64xf32>
    %165 = arith.truncf %164 : vector<16x64xf32> to vector<16x64xbf16>
    %c176 = arith.constant 176 : index
    %c0_49 = arith.constant 0 : index
    %166 = vector.load %arg3[%c176, %c0_49] : memref<400x128xbf16, #tpu.memory_space<vmem>>, vector<64x128xbf16>
    %167 = vector.extract_strided_slice %166 {offsets = [0, 0], sizes = [64, 32], strides = [1, 1]} : vector<64x128xbf16> to vector<64x32xbf16>
    %cst_50 = arith.constant dense<0.000000e+00> : vector<16x32xf32>
    %168 = tpu.matmul %165, %167, %cst_50 {dimension_numbers = #tpu.dot_dimension_numbers<[1], [0], [0], [1], [0, 0, 1, 1], [], []>} : vector<16x64xbf16>, vector<64x32xbf16>, vector<16x32xf32> -> vector<16x32xf32>
    %c56_51 = arith.constant 56 : index
    %c0_52 = arith.constant 0 : index
    %169 = vector.load %arg4[%c56_51, %c0_52] : memref<144x128xf32, #tpu.memory_space<vmem>>, vector<1x128xf32>
    %170 = vector.extract_strided_slice %169 {offsets = [0, 0], sizes = [1, 32], strides = [1, 1]} : vector<1x128xf32> to vector<1x32xf32>
    %171 = vector.broadcast %170 : vector<1x32xf32> to vector<16x32xf32>
    %172 = arith.addf %168, %171 : vector<16x32xf32>
    %173 = arith.addf %172, %143 : vector<16x32xf32>
    %c64 = arith.constant 64 : index
    %c0_53 = arith.constant 0 : index
    %174 = vector.load %arg4[%c64, %c0_53] : memref<144x128xf32, #tpu.memory_space<vmem>>, vector<1x128xf32>
    %175 = vector.extract_strided_slice %174 {offsets = [0, 0], sizes = [1, 32], strides = [1, 1]} : vector<1x128xf32> to vector<1x32xf32>
    %c72_54 = arith.constant 72 : index
    %c0_55 = arith.constant 0 : index
    %176 = vector.load %arg4[%c72_54, %c0_55] : memref<144x128xf32, #tpu.memory_space<vmem>>, vector<1x128xf32>
    %177 = vector.extract_strided_slice %176 {offsets = [0, 0], sizes = [1, 32], strides = [1, 1]} : vector<1x128xf32> to vector<1x32xf32>
    %cst_56 = arith.constant dense<0.000000e+00> : vector<16xf32>
    %178 = vector.multi_reduction <add>, %173, %cst_56 [1] : vector<16x32xf32> to vector<16xf32>
    %179 = vector.shape_cast %178 : vector<16xf32> to vector<16x1xf32>
    %cst_57 = arith.constant 3.200000e+01 : f32
    %180 = vector.broadcast %cst_57 : f32 to vector<16x1xf32>
    %181 = arith.divf %179, %180 : vector<16x1xf32>
    %182 = vector.broadcast %181 : vector<16x1xf32> to vector<16x32xf32>
    %183 = arith.subf %173, %182 : vector<16x32xf32>
    %184 = arith.mulf %183, %183 : vector<16x32xf32>
    %cst_58 = arith.constant dense<0.000000e+00> : vector<16xf32>
    %185 = vector.multi_reduction <add>, %184, %cst_58 [1] : vector<16x32xf32> to vector<16xf32>
    %186 = vector.shape_cast %185 : vector<16xf32> to vector<16x1xf32>
    %cst_59 = arith.constant 3.200000e+01 : f32
    %187 = vector.broadcast %cst_59 : f32 to vector<16x1xf32>
    %188 = arith.divf %186, %187 : vector<16x1xf32>
    %cst_60 = arith.constant 9.99999996E-13 : f32
    %189 = vector.broadcast %cst_60 : f32 to vector<16x1xf32>
    %190 = arith.addf %188, %189 : vector<16x1xf32>
    %191 = math.rsqrt %190 : vector<16x1xf32>
    %192 = vector.broadcast %191 : vector<16x1xf32> to vector<16x32xf32>
    %193 = arith.mulf %183, %192 : vector<16x32xf32>
    %194 = vector.broadcast %175 : vector<1x32xf32> to vector<16x32xf32>
    %195 = arith.mulf %193, %194 : vector<16x32xf32>
    %196 = vector.broadcast %177 : vector<1x32xf32> to vector<16x32xf32>
    %197 = arith.addf %195, %196 : vector<16x32xf32>
    %198 = arith.truncf %197 : vector<16x32xf32> to vector<16x32xbf16>
    %c240 = arith.constant 240 : index
    %c0_61 = arith.constant 0 : index
    %199 = vector.load %arg3[%c240, %c0_61] : memref<400x128xbf16, #tpu.memory_space<vmem>>, vector<32x128xbf16>
    %200 = vector.extract_strided_slice %199 {offsets = [0, 0], sizes = [32, 96], strides = [1, 1]} : vector<32x128xbf16> to vector<32x96xbf16>
    %cst_62 = arith.constant dense<0.000000e+00> : vector<16x96xf32>
    %201 = tpu.matmul %198, %200, %cst_62 {dimension_numbers = #tpu.dot_dimension_numbers<[1], [0], [0], [1], [0, 0, 1, 1], [], []>} : vector<16x32xbf16>, vector<32x96xbf16>, vector<16x96xf32> -> vector<16x96xf32>
    %c80_63 = arith.constant 80 : index
    %c0_64 = arith.constant 0 : index
    %202 = vector.load %arg4[%c80_63, %c0_64] : memref<144x128xf32, #tpu.memory_space<vmem>>, vector<1x128xf32>
    %203 = vector.extract_strided_slice %202 {offsets = [0, 0], sizes = [1, 96], strides = [1, 1]} : vector<1x128xf32> to vector<1x96xf32>
    %204 = vector.broadcast %203 : vector<1x96xf32> to vector<16x96xf32>
    %205 = arith.addf %201, %204 : vector<16x96xf32>
    %206 = vector.shape_cast %205 : vector<16x96xf32> to vector<2x8x96xf32>
    %207 = vector.extract_strided_slice %206 {offsets = [0, 0, 0], sizes = [2, 8, 16], strides = [1, 1, 1]} : vector<2x8x96xf32> to vector<2x8x16xf32>
    %208 = arith.truncf %207 : vector<2x8x16xf32> to vector<2x8x16xbf16>
    %209 = vector.extract_strided_slice %206 {offsets = [0, 0, 32], sizes = [2, 8, 16], strides = [1, 1, 1]} : vector<2x8x96xf32> to vector<2x8x16xf32>
    %210 = arith.truncf %209 : vector<2x8x16xf32> to vector<2x8x16xbf16>
    %211 = vector.extract_strided_slice %206 {offsets = [0, 0, 64], sizes = [2, 8, 16], strides = [1, 1, 1]} : vector<2x8x96xf32> to vector<2x8x16xf32>
    %212 = arith.truncf %211 : vector<2x8x16xf32> to vector<2x8x16xbf16>
    "tpu.trace_start"() <{level = 10 : i32, message = "bqd,bkd->bqk"}> : () -> ()
    %cst_65 = arith.constant dense<0.000000e+00> : vector<2x8x8xf32>
    %213 = tpu.matmul %208, %210, %cst_65 {dimension_numbers = #tpu.dot_dimension_numbers<[2], [2], [1], [1], [0, 0, 0, 1, 1, 1], [0], [0]>} : vector<2x8x16xbf16>, vector<2x8x16xbf16>, vector<2x8x8xf32> -> vector<2x8x8xf32>
    "tpu.trace_stop"() : () -> ()
    %cst_66 = arith.constant 2.500000e-01 : f32
    %214 = vector.broadcast %cst_66 : f32 to vector<2x8x8xf32>
    %215 = arith.mulf %213, %214 : vector<2x8x8xf32>
    %216 = arith.addf %215, %55 : vector<2x8x8xf32>
    %cst_67 = arith.constant dense<0xFF800000> : vector<2x8xf32>
    %217 = vector.multi_reduction <maximumf>, %216, %cst_67 [2] : vector<2x8x8xf32> to vector<2x8xf32>
    %218 = vector.shape_cast %217 : vector<2x8xf32> to vector<2x8x1xf32>
    %219 = vector.broadcast %218 : vector<2x8x1xf32> to vector<2x8x8xf32>
    %220 = arith.subf %216, %219 : vector<2x8x8xf32>
    %221 = math.exp %220 : vector<2x8x8xf32>
    %cst_68 = arith.constant dense<0.000000e+00> : vector<2x8xf32>
    %222 = vector.multi_reduction <add>, %221, %cst_68 [2] : vector<2x8x8xf32> to vector<2x8xf32>
    %223 = vector.shape_cast %222 : vector<2x8xf32> to vector<2x8x1xf32>
    %224 = tpu.reciprocal %223 {approx = true} : vector<2x8x1xf32> -> vector<2x8x1xf32>
    %225 = vector.broadcast %224 : vector<2x8x1xf32> to vector<2x8x8xf32>
    %226 = arith.mulf %221, %225 : vector<2x8x8xf32>
    %227 = arith.truncf %226 : vector<2x8x8xf32> to vector<2x8x8xbf16>
    "tpu.trace_start"() <{level = 10 : i32, message = "bqk,bkd->bqd"}> : () -> ()
    %cst_69 = arith.constant dense<0.000000e+00> : vector<2x8x16xf32>
    %228 = tpu.matmul %227, %212, %cst_69 {dimension_numbers = #tpu.dot_dimension_numbers<[2], [1], [1], [2], [0, 0, 0, 1, 1, 2], [0], [0]>} : vector<2x8x8xbf16>, vector<2x8x16xbf16>, vector<2x8x16xf32> -> vector<2x8x16xf32>
    "tpu.trace_stop"() : () -> ()
    %229 = vector.extract_strided_slice %206 {offsets = [0, 0, 16], sizes = [2, 8, 16], strides = [1, 1, 1]} : vector<2x8x96xf32> to vector<2x8x16xf32>
    %230 = arith.truncf %229 : vector<2x8x16xf32> to vector<2x8x16xbf16>
    %231 = vector.extract_strided_slice %206 {offsets = [0, 0, 48], sizes = [2, 8, 16], strides = [1, 1, 1]} : vector<2x8x96xf32> to vector<2x8x16xf32>
    %232 = arith.truncf %231 : vector<2x8x16xf32> to vector<2x8x16xbf16>
    %233 = vector.extract_strided_slice %206 {offsets = [0, 0, 80], sizes = [2, 8, 16], strides = [1, 1, 1]} : vector<2x8x96xf32> to vector<2x8x16xf32>
    %234 = arith.truncf %233 : vector<2x8x16xf32> to vector<2x8x16xbf16>
    "tpu.trace_start"() <{level = 10 : i32, message = "bqd,bkd->bqk"}> : () -> ()
    %cst_70 = arith.constant dense<0.000000e+00> : vector<2x8x8xf32>
    %235 = tpu.matmul %230, %232, %cst_70 {dimension_numbers = #tpu.dot_dimension_numbers<[2], [2], [1], [1], [0, 0, 0, 1, 1, 1], [0], [0]>} : vector<2x8x16xbf16>, vector<2x8x16xbf16>, vector<2x8x8xf32> -> vector<2x8x8xf32>
    "tpu.trace_stop"() : () -> ()
    %cst_71 = arith.constant 2.500000e-01 : f32
    %236 = vector.broadcast %cst_71 : f32 to vector<2x8x8xf32>
    %237 = arith.mulf %235, %236 : vector<2x8x8xf32>
    %238 = arith.addf %237, %55 : vector<2x8x8xf32>
    %cst_72 = arith.constant dense<0xFF800000> : vector<2x8xf32>
    %239 = vector.multi_reduction <maximumf>, %238, %cst_72 [2] : vector<2x8x8xf32> to vector<2x8xf32>
    %240 = vector.shape_cast %239 : vector<2x8xf32> to vector<2x8x1xf32>
    %241 = vector.broadcast %240 : vector<2x8x1xf32> to vector<2x8x8xf32>
    %242 = arith.subf %238, %241 : vector<2x8x8xf32>
    %243 = math.exp %242 : vector<2x8x8xf32>
    %cst_73 = arith.constant dense<0.000000e+00> : vector<2x8xf32>
    %244 = vector.multi_reduction <add>, %243, %cst_73 [2] : vector<2x8x8xf32> to vector<2x8xf32>
    %245 = vector.shape_cast %244 : vector<2x8xf32> to vector<2x8x1xf32>
    %246 = tpu.reciprocal %245 {approx = true} : vector<2x8x1xf32> -> vector<2x8x1xf32>
    %247 = vector.broadcast %246 : vector<2x8x1xf32> to vector<2x8x8xf32>
    %248 = arith.mulf %243, %247 : vector<2x8x8xf32>
    %249 = arith.truncf %248 : vector<2x8x8xf32> to vector<2x8x8xbf16>
    "tpu.trace_start"() <{level = 10 : i32, message = "bqk,bkd->bqd"}> : () -> ()
    %cst_74 = arith.constant dense<0.000000e+00> : vector<2x8x16xf32>
    %250 = tpu.matmul %249, %234, %cst_74 {dimension_numbers = #tpu.dot_dimension_numbers<[2], [1], [1], [2], [0, 0, 0, 1, 1, 2], [0], [0]>} : vector<2x8x8xbf16>, vector<2x8x16xbf16>, vector<2x8x16xf32> -> vector<2x8x16xf32>
    "tpu.trace_stop"() : () -> ()
    %251 = tpu.concatenate %228, %250 in 2 : vector<2x8x16xf32>, vector<2x8x16xf32> -> vector<2x8x32xf32>
    %252 = vector.shape_cast %251 : vector<2x8x32xf32> to vector<16x32xf32>
    %253 = arith.truncf %252 : vector<16x32xf32> to vector<16x32xbf16>
    %c272 = arith.constant 272 : index
    %c0_75 = arith.constant 0 : index
    %254 = vector.load %arg3[%c272, %c0_75] : memref<400x128xbf16, #tpu.memory_space<vmem>>, vector<32x128xbf16>
    %255 = vector.extract_strided_slice %254 {offsets = [0, 0], sizes = [32, 32], strides = [1, 1]} : vector<32x128xbf16> to vector<32x32xbf16>
    %cst_76 = arith.constant dense<0.000000e+00> : vector<16x32xf32>
    %256 = tpu.matmul %253, %255, %cst_76 {dimension_numbers = #tpu.dot_dimension_numbers<[1], [0], [0], [1], [0, 0, 1, 1], [], []>} : vector<16x32xbf16>, vector<32x32xbf16>, vector<16x32xf32> -> vector<16x32xf32>
    %c88 = arith.constant 88 : index
    %c0_77 = arith.constant 0 : index
    %257 = vector.load %arg4[%c88, %c0_77] : memref<144x128xf32, #tpu.memory_space<vmem>>, vector<1x128xf32>
    %258 = vector.extract_strided_slice %257 {offsets = [0, 0], sizes = [1, 32], strides = [1, 1]} : vector<1x128xf32> to vector<1x32xf32>
    %259 = vector.broadcast %258 : vector<1x32xf32> to vector<16x32xf32>
    %260 = arith.addf %256, %259 : vector<16x32xf32>
    %261 = arith.addf %260, %197 : vector<16x32xf32>
    %c96 = arith.constant 96 : index
    %c0_78 = arith.constant 0 : index
    %262 = vector.load %arg4[%c96, %c0_78] : memref<144x128xf32, #tpu.memory_space<vmem>>, vector<1x128xf32>
    %263 = vector.extract_strided_slice %262 {offsets = [0, 0], sizes = [1, 32], strides = [1, 1]} : vector<1x128xf32> to vector<1x32xf32>
    %c104 = arith.constant 104 : index
    %c0_79 = arith.constant 0 : index
    %264 = vector.load %arg4[%c104, %c0_79] : memref<144x128xf32, #tpu.memory_space<vmem>>, vector<1x128xf32>
    %265 = vector.extract_strided_slice %264 {offsets = [0, 0], sizes = [1, 32], strides = [1, 1]} : vector<1x128xf32> to vector<1x32xf32>
    %cst_80 = arith.constant dense<0.000000e+00> : vector<16xf32>
    %266 = vector.multi_reduction <add>, %261, %cst_80 [1] : vector<16x32xf32> to vector<16xf32>
    %267 = vector.shape_cast %266 : vector<16xf32> to vector<16x1xf32>
    %cst_81 = arith.constant 3.200000e+01 : f32
    %268 = vector.broadcast %cst_81 : f32 to vector<16x1xf32>
    %269 = arith.divf %267, %268 : vector<16x1xf32>
    %270 = vector.broadcast %269 : vector<16x1xf32> to vector<16x32xf32>
    %271 = arith.subf %261, %270 : vector<16x32xf32>
    %272 = arith.mulf %271, %271 : vector<16x32xf32>
    %cst_82 = arith.constant dense<0.000000e+00> : vector<16xf32>
    %273 = vector.multi_reduction <add>, %272, %cst_82 [1] : vector<16x32xf32> to vector<16xf32>
    %274 = vector.shape_cast %273 : vector<16xf32> to vector<16x1xf32>
    %cst_83 = arith.constant 3.200000e+01 : f32
    %275 = vector.broadcast %cst_83 : f32 to vector<16x1xf32>
    %276 = arith.divf %274, %275 : vector<16x1xf32>
    %cst_84 = arith.constant 9.99999996E-13 : f32
    %277 = vector.broadcast %cst_84 : f32 to vector<16x1xf32>
    %278 = arith.addf %276, %277 : vector<16x1xf32>
    %279 = math.rsqrt %278 : vector<16x1xf32>
    %280 = vector.broadcast %279 : vector<16x1xf32> to vector<16x32xf32>
    %281 = arith.mulf %271, %280 : vector<16x32xf32>
    %282 = vector.broadcast %263 : vector<1x32xf32> to vector<16x32xf32>
    %283 = arith.mulf %281, %282 : vector<16x32xf32>
    %284 = vector.broadcast %265 : vector<1x32xf32> to vector<16x32xf32>
    %285 = arith.addf %283, %284 : vector<16x32xf32>
    %286 = arith.truncf %285 : vector<16x32xf32> to vector<16x32xbf16>
    %c304 = arith.constant 304 : index
    %c0_85 = arith.constant 0 : index
    %287 = vector.load %arg3[%c304, %c0_85] : memref<400x128xbf16, #tpu.memory_space<vmem>>, vector<32x128xbf16>
    %288 = vector.extract_strided_slice %287 {offsets = [0, 0], sizes = [32, 64], strides = [1, 1]} : vector<32x128xbf16> to vector<32x64xbf16>
    %cst_86 = arith.constant dense<0.000000e+00> : vector<16x64xf32>
    %289 = tpu.matmul %286, %288, %cst_86 {dimension_numbers = #tpu.dot_dimension_numbers<[1], [0], [0], [1], [0, 0, 1, 1], [], []>} : vector<16x32xbf16>, vector<32x64xbf16>, vector<16x64xf32> -> vector<16x64xf32>
    %c112_87 = arith.constant 112 : index
    %c0_88 = arith.constant 0 : index
    %290 = vector.load %arg4[%c112_87, %c0_88] : memref<144x128xf32, #tpu.memory_space<vmem>>, vector<1x128xf32>
    %291 = vector.extract_strided_slice %290 {offsets = [0, 0], sizes = [1, 64], strides = [1, 1]} : vector<1x128xf32> to vector<1x64xf32>
    %292 = vector.broadcast %291 : vector<1x64xf32> to vector<16x64xf32>
    %293 = arith.addf %289, %292 : vector<16x64xf32>
    %cst_89 = arith.constant 5.000000e-01 : f32
    %294 = vector.broadcast %cst_89 : f32 to vector<16x64xf32>
    %295 = arith.mulf %294, %293 : vector<16x64xf32>
    %cst_90 = arith.constant 4.471500e-02 : f32
    %296 = vector.broadcast %cst_90 : f32 to vector<16x64xf32>
    %297 = arith.mulf %296, %293 : vector<16x64xf32>
    %298 = arith.mulf %297, %293 : vector<16x64xf32>
    %299 = arith.mulf %298, %293 : vector<16x64xf32>
    %300 = arith.addf %293, %299 : vector<16x64xf32>
    %cst_91 = arith.constant 0.797884583 : f32
    %301 = vector.broadcast %cst_91 : f32 to vector<16x64xf32>
    %302 = arith.mulf %301, %300 : vector<16x64xf32>
    %303 = math.tanh %302 : vector<16x64xf32>
    %cst_92 = arith.constant 1.000000e+00 : f32
    %304 = vector.broadcast %cst_92 : f32 to vector<16x64xf32>
    %305 = arith.addf %304, %303 : vector<16x64xf32>
    %306 = arith.mulf %295, %305 : vector<16x64xf32>
    %307 = arith.truncf %306 : vector<16x64xf32> to vector<16x64xbf16>
    %c336 = arith.constant 336 : index
    %c0_93 = arith.constant 0 : index
    %308 = vector.load %arg3[%c336, %c0_93] : memref<400x128xbf16, #tpu.memory_space<vmem>>, vector<64x128xbf16>
    %309 = vector.extract_strided_slice %308 {offsets = [0, 0], sizes = [64, 32], strides = [1, 1]} : vector<64x128xbf16> to vector<64x32xbf16>
    %cst_94 = arith.constant dense<0.000000e+00> : vector<16x32xf32>
    %310 = tpu.matmul %307, %309, %cst_94 {dimension_numbers = #tpu.dot_dimension_numbers<[1], [0], [0], [1], [0, 0, 1, 1], [], []>} : vector<16x64xbf16>, vector<64x32xbf16>, vector<16x32xf32> -> vector<16x32xf32>
    %c120 = arith.constant 120 : index
    %c0_95 = arith.constant 0 : index
    %311 = vector.load %arg4[%c120, %c0_95] : memref<144x128xf32, #tpu.memory_space<vmem>>, vector<1x128xf32>
    %312 = vector.extract_strided_slice %311 {offsets = [0, 0], sizes = [1, 32], strides = [1, 1]} : vector<1x128xf32> to vector<1x32xf32>
    %313 = vector.broadcast %312 : vector<1x32xf32> to vector<16x32xf32>
    %314 = arith.addf %310, %313 : vector<16x32xf32>
    %315 = arith.addf %314, %285 : vector<16x32xf32>
    %c0_96 = arith.constant 0 : index
    %c0_97 = arith.constant 0 : index
    %316 = vector.load %arg2[%c0_96, %c0_97] : memref<2x1xi32, #tpu.memory_space<vmem>>, vector<2x1xi32>
    %c0_i32 = arith.constant 0 : i32
    %c7_i32 = arith.constant 7 : i32
    %317 = vector.broadcast %c0_i32 : i32 to vector<2x1xi32>
    %318 = arith.maxsi %317, %316 : vector<2x1xi32>
    %319 = vector.broadcast %c7_i32 : i32 to vector<2x1xi32>
    %320 = arith.minsi %319, %318 : vector<2x1xi32>
    %321 = tpu.iota {dimensions = array<i32: 1>} : vector<2x8xi32>
    %322 = vector.broadcast %320 : vector<2x1xi32> to vector<2x8xi32>
    %323 = arith.cmpi eq, %321, %322 : vector<2x8xi32>
    %cst_98 = arith.constant 1.000000e+00 : f32
    %cst_99 = arith.constant 0.000000e+00 : f32
    %324 = vector.broadcast %cst_98 : f32 to vector<2x8xf32>
    %325 = vector.broadcast %cst_99 : f32 to vector<2x8xf32>
    %326 = arith.select %323, %324, %325 : vector<2x8xi1>, vector<2x8xf32>
    %327 = vector.shape_cast %315 : vector<16x32xf32> to vector<2x8x32xf32>
    %328 = vector.shape_cast %326 : vector<2x8xf32> to vector<2x8x1xf32>
    %329 = vector.broadcast %328 : vector<2x8x1xf32> to vector<2x8x32xf32>
    %330 = arith.mulf %327, %329 : vector<2x8x32xf32>
    %cst_100 = arith.constant dense<0.000000e+00> : vector<2x32xf32>
    %331 = vector.multi_reduction <add>, %330, %cst_100 [1] : vector<2x8x32xf32> to vector<2x32xf32>
    %c128 = arith.constant 128 : index
    %c0_101 = arith.constant 0 : index
    %332 = vector.load %arg4[%c128, %c0_101] : memref<144x128xf32, #tpu.memory_space<vmem>>, vector<1x128xf32>
    %333 = vector.extract_strided_slice %332 {offsets = [0, 0], sizes = [1, 32], strides = [1, 1]} : vector<1x128xf32> to vector<1x32xf32>
    %c136 = arith.constant 136 : index
    %c0_102 = arith.constant 0 : index
    %334 = vector.load %arg4[%c136, %c0_102] : memref<144x128xf32, #tpu.memory_space<vmem>>, vector<1x128xf32>
    %335 = vector.extract_strided_slice %334 {offsets = [0, 0], sizes = [1, 32], strides = [1, 1]} : vector<1x128xf32> to vector<1x32xf32>
    %cst_103 = arith.constant dense<0.000000e+00> : vector<2xf32>
    %336 = vector.multi_reduction <add>, %331, %cst_103 [1] : vector<2x32xf32> to vector<2xf32>
    %337 = vector.shape_cast %336 : vector<2xf32> to vector<2x1xf32>
    %cst_104 = arith.constant 3.200000e+01 : f32
    %338 = vector.broadcast %cst_104 : f32 to vector<2x1xf32>
    %339 = arith.divf %337, %338 : vector<2x1xf32>
    %340 = vector.broadcast %339 : vector<2x1xf32> to vector<2x32xf32>
    %341 = arith.subf %331, %340 : vector<2x32xf32>
    %342 = arith.mulf %341, %341 : vector<2x32xf32>
    %cst_105 = arith.constant dense<0.000000e+00> : vector<2xf32>
    %343 = vector.multi_reduction <add>, %342, %cst_105 [1] : vector<2x32xf32> to vector<2xf32>
    %344 = vector.shape_cast %343 : vector<2xf32> to vector<2x1xf32>
    %cst_106 = arith.constant 3.200000e+01 : f32
    %345 = vector.broadcast %cst_106 : f32 to vector<2x1xf32>
    %346 = arith.divf %344, %345 : vector<2x1xf32>
    %cst_107 = arith.constant 9.99999996E-13 : f32
    %347 = vector.broadcast %cst_107 : f32 to vector<2x1xf32>
    %348 = arith.addf %346, %347 : vector<2x1xf32>
    %349 = math.rsqrt %348 : vector<2x1xf32>
    %350 = vector.broadcast %349 : vector<2x1xf32> to vector<2x32xf32>
    %351 = arith.mulf %341, %350 : vector<2x32xf32>
    %352 = vector.broadcast %333 : vector<1x32xf32> to vector<2x32xf32>
    %353 = arith.mulf %351, %352 : vector<2x32xf32>
    %354 = vector.broadcast %335 : vector<1x32xf32> to vector<2x32xf32>
    %355 = arith.addf %353, %354 : vector<2x32xf32>
    %c0_108 = arith.constant 0 : index
    %c0_109 = arith.constant 0 : index
    %356 = vector.load %arg5[%c0_108, %c0_109] : memref<2x32xf32, #tpu.memory_space<vmem>>, vector<2x32xf32>
    tpu.vector_store %arg5[%c0_108, %c0_109], %355 {strides = array<i32>} : memref<2x32xf32, #tpu.memory_space<vmem>>, vector<2x32xf32>,
    return
  }
}

</mosaic_0001>

<bundles_post_ra>
// kernel: bert_sentence_encoder_prompt.1
= control target key start
LH: loop header
LB: loop body
LE: loop exit
PB: predicated region body
PF: predicated region fallthrough
CT: control target
= control target key end

     0   :  { %10 = vsyncpa [#allocation3], 0  ;;  %s1911_s0 = inlined_call_operand.vmem [shape: s32[2,8], index: 0, kind: input, shape index: {}]   ;;  %s1912_s1 = inlined_call_operand.vmem [shape: s32[2,8], index: 1, kind: input, shape index: {}]   ;;  %s1913_s2 = inlined_call_operand.vmem [shape: s32[2,1], index: 2, kind: input, shape index: {}]   ;;  %s1914_s3 = inlined_call_operand.hbm [shape: bf16[400,128], index: 3, kind: input, shape index: {}]   ;;  %s1915_s4 = inlined_call_operand.hbm [shape: f32[144,128], index: 4, kind: input, shape index: {}]   ;;  %s1916_s5 = inlined_call_operand.hbm [shape: f32[2,32], index: 5, kind: output, shape index: {}]  }
   0x1   :  { %11 = vsyncpa [#allocation6], 0 }
   0x2   :  { %12 = vsyncpa [#allocation4], 0  ;;  %s23_s20 = sshll.u32 %s1914_s3, 4  ;;  %s1663_s21 = smov [#allocation2]   ;;  %s24_s20 = int_to_ptr.hbm [resolvable:$true] %s23_s20 }
   0x3   :  { %s25_s22 = sshll.u32 %s1663_s21, 4  ;;  %s36_s25 = sshll.u32 %s1915_s4, 4  ;;  %s26_s22 = int_to_ptr.vmem [resolvable:$true] %s25_s22  ;;  %s37_s25 = int_to_ptr.hbm [resolvable:$true] %s36_s25 }
   0x4   :  { %s1664_s26 = smov 64   ;;  %s1665_s27 = smov 4  }
   0x5   :  { %31 = dma.hbm_to_vmem [thread:$0]  %s24_s20, 3200, %s26_s22, [#allocation3], %s1664_s26, %s1664_s26, %s1665_s27  }
   0x6   :  { %s1666_s28 = smov [#allocation5]   ;;  %s1667_s30 = smov 128  }
   0x7   :  { %s38_s29 = sshll.u32 %s1666_s28, 4  ;;  %s1668_s6 = smov 8   ;;  %s39_s29 = int_to_ptr.vmem [resolvable:$true] %s38_s29 }
   0x8   :  { %44 = dma.hbm_to_vmem [thread:$0]  %s37_s25, 2304, %s39_s29, [#allocation6], %s1667_s30, %s1667_s30, %s1668_s6  }
   0x9   :  { %1657 = dma.done.wait [#allocation3], 3200  }
   0xa   :  { %1658 = vsyncadd [#allocation3], 4294964096 }
   0xb   :  { %1659 = dma.done.wait [#allocation6], 2304  }
   0xc   :  { %1660 = vsyncadd [#allocation6], 4294964992  ;;  %v54_v0 = vlaneseq  ;;  %v56_v2 = vld [vmem:[%s1911_s0] sm:$0x3]  ;;  %v82_v3 = vld [vmem:[#allocation2 + $0x18] sm:$0x1] }
   0xd   :  { %v57_v4 = vperm.slane %v56_v2, 0  ;;  %v100_v5 = vunpack.c.l.b16 %v82_v3  ;;  %vm112_vm0 = vcmask 1040384   ;;  %v64_v8 = vperm.slane %v56_v2, 1  ;;  %v1454_v9 = vld [vmem:[#allocation2 + $0x10] sm:$0xff]  ;;  %v1453_v10 = vld [vmem:[#allocation2 + $0x8] sm:$0xff]  ;;  %v1452_v11 = vld [vmem:[#allocation2] sm:$0xff] }
   0xe   :  { %v59_v1 = vshrl.u32 %v54_v0, 7  ;;  %v1719_v13 = vand.u32 127, %v54_v0  ;;  %v1669_v15 = vmov 0.0   ;;  %vm108_vm3 = vcmask 408576   ;;  %v85_v19 = vld [vmem:[#allocation2 + $0x24] sm:$0x1] }
   0xf   :  { %v104_v6 = vpack.c.b16 %v100_v5, %v100_v5  ;;  %v83_v20 = vld [vmem:[#allocation2 + $0x1c] sm:$0xf]  ;;  %v86_v21 = vunpack.c.l.bf16 %v85_v19  ;;  %vm135_vm4 = vcmask 261120   ;;  %v1670_v32 = vmov 32.0   ;;  %v1456_v49 = vld [vmem:[#allocation2 + $0x30] sm:$0xff]  ;;  %v1455_v51 = vld [vmem:[#allocation2 + $0x28] sm:$0xff] }
  0x10   :  { %1490 = vset.pattern.permute.xlu0 %v59_v1  ;;  %v84_v22 = vunpack.c.l.bf16 %v83_v20  ;;  %1525 = vrcp.f32 %v1670_v32  ;;  %231 = vmatpush.bf16.msra.mxu1 %v1456_v49  ;;  %s1671_s0 = smov 80   ;;  %s1672_s7 = smov 96   ;;  %vm246_vm12 = vcmask 130048   ;;  %vm294_vm13 = vcmask 64512  }
  0x11   :  { %v114_v7 = vsel %vm112_vm0, %v104_v6, 0  ;;  %v130_v23 = vperm.slane %v86_v21, 0  ;;  %v1507_v6 = vld [vmem:[#allocation5] ss:$0 sm:$0xff]  ;;  %s1673_s8 = smov 112   ;;  %vm324_vm14 = vcmask 1043456  }
  0x12   :  { %120 = vmatpush.bf16.msra.mxu0 %v114_v7  ;;  %s1675_s11 = smov 16   ;;  %s1324_s17 = sshll.u32 %s1916_s5, 4  ;;  %s1325_s17 = int_to_ptr.hbm [resolvable:$true] %s1324_s17 }
  0x14   :  { %232 = vmatpush.bf16.msra.mxu1 %v1455_v51 }
  0x16   :  { %121 = vmatpush.bf16.msra.mxu0 %v1454_v9  ;;  %v1526_v33 = vpop.eup %1525 }
  0x17   :  { %v143_v34 = vmul.f32 32.0, %v1526_v33  ;;  %vm147_vm5 = vweird.f32 %v1526_v33 }
  0x18   :  { %62 = vperm.xlu0 %1490, %v57_v4  }
  0x19   :  { %v144_v35 = vsub.f32 1.0, %v143_v34 }
  0x1a   :  { %122 = vmatpush.bf16.msra.mxu0 %v1453_v10 }
  0x1b   :  { %v145_v36 = vmul.f32 %v1526_v33, %v144_v35 }
  0x1d   :  { %v146_v37 = vadd.f32 %v1526_v33, %v145_v36 }
  0x1e   :  { %123 = vmatpush.bf16.msra.mxu0 %v1452_v11  ;;  %v1508_v11 = vld [vmem:[#allocation5 + $0x8] ss:$0 sm:$0xff] }
  0x1f   :  { %v1727_v38 = vsel %vm147_vm5, %v1526_v33, %v146_v37 }
  0x20   :  { %69 = vperm.xlu0 %1490, %v64_v8  }
  0x8a   :  { %v63_v12 = vpop.permute.xlu0 %62 }
  0x8b   :  { %vm71_vm1 = vcmp.eq.s32.totalorder %v1719_v13, %v63_v12 }
  0x8c   :  { %v73_v16 = vsel %vm71_vm1, 1.0, %v1669_v15 }
  0x92   :  { %v70_v14 = vpop.permute.xlu0 %69 }
  0x93   :  { %vm72_vm2 = vcmp.eq.s32.totalorder %v1719_v13, %v70_v14 }
  0x94   :  { %v74_v17 = vsel %vm72_vm2, 1.0, %v1669_v15 }
  0x95   :  { %v75_v18 = vpack.c.bf16 %v74_v17, %v73_v16 }
  0x97   :  { %1347 = vmatmul.msk.bf16.vlgmr.msra.gmra.mxu0 %vm108_vm3, %v75_v18  ;;  %v1509_v18 = vld [vmem:[#allocation5 + $0x10] ss:$0 sm:$0xff] }
 0x114   :  { %v125_v24 = vpop.f32.mrf.mxu0 }
 0x115   :  { %v126_v25 = vadd.f32 %v125_v24, %v84_v22 }
 0x117   :  { %v131_v26 = vadd.f32 %v130_v23, %v126_v25 }
 0x119   :  { %v136_v27 = vsel %vm135_vm4, %v131_v26, 0.0 }
 0x11a   :  { %137 = vadd.xlane.f32.xlu1 %v136_v27 }
 0x11c   :  { %v127_v28 = vpop.f32.mrf.mxu0 }
 0x11d   :  { %v128_v29 = vadd.f32 %v127_v28, %v84_v22 }
 0x11f   :  { %v132_v30 = vadd.f32 %v130_v23, %v128_v29 }
 0x121   :  { %v139_v31 = vsel %vm135_vm4, %v132_v30, 0.0 }
 0x122   :  { %140 = vadd.xlane.f32.xlu1 %v139_v31 }
 0x18d   :  { %v138_v39 = vpop.xlane.xlu1 %137 }
 0x18e   :  { %v149_v40 = vmul.f32 %v1727_v38, %v138_v39 }
 0x190   :  { %v151_v41 = vsub.f32 %v131_v26, %v149_v40  ;;  %v193_v40 = vld [vmem:[%s1912_s1] sm:$0x3]  ;;  %s1674_s1 = smov 48  }
 0x192   :  { %v153_v42 = vmul.f32 %v151_v41, %v151_v41 }
 0x194   :  { %v155_v43 = vsel %vm135_vm4, %v153_v42, 0.0 }
 0x195   :  { %156 = vadd.xlane.f32.xlu2 %v155_v43  ;;  %v141_v44 = vpop.xlane.xlu1 %140 }
 0x196   :  { %v150_v45 = vmul.f32 %v1727_v38, %v141_v44 }
 0x198   :  { %v152_v46 = vsub.f32 %v132_v30, %v150_v45 }
 0x19a   :  { %v154_v47 = vmul.f32 %v152_v46, %v152_v46 }
 0x19c   :  { %v158_v48 = vsel %vm135_vm4, %v154_v47, 0.0 }
 0x19d   :  { %159 = vadd.xlane.f32.xlu2 %v158_v48 }
 0x208   :  { %v157_v50 = vpop.xlane.xlu2 %156 }
 0x209   :  { %v161_v52 = vmul.f32 %v157_v50, %v1727_v38 }
 0x20b   :  { %v163_v53 = vadd.f32 1e-12, %v161_v52 }
 0x20d   :  { %1527 = vrsqrt.f32 %v163_v53  ;;  %vm171_vm7 = vweird.f32 %v163_v53 }
 0x210   :  { %v160_v54 = vpop.xlane.xlu2 %159 }
 0x211   :  { %v162_v55 = vmul.f32 %v160_v54, %v1727_v38 }
 0x213   :  { %v1528_v56 = vpop.eup %1527  ;;  %v164_v57 = vadd.f32 1e-12, %v162_v55 }
 0x214   :  { %v166_v58 = vmul.f32 %v1528_v56, %v163_v53  ;;  %vm172_vm6 = vweird.f32 %v1528_v56 }
 0x215   :  { %1529 = vrsqrt.f32 %v164_v57  ;;  %vm173_vm8 = vmor %vm171_vm7, %vm172_vm6  ;;  %vm181_vm10 = vweird.f32 %v164_v57  ;;  %vm667_vm6 = vcmask 523264  }
 0x216   :  { %v167_v59 = vmul.f32 %v1528_v56, %v166_v58 }
 0x218   :  { %v168_v60 = vmul.f32 0.5, %v167_v59 }
 0x21a   :  { %v169_v61 = vsub.f32 1.5, %v168_v60 }
 0x21b   :  { %v1530_v62 = vpop.eup %1529 }
 0x21c   :  { %v170_v63 = vmul.f32 %v1528_v56, %v169_v61  ;;  %v176_v0 = vmul.f32 %v1530_v62, %v164_v57  ;;  %vm182_vm9 = vweird.f32 %v1530_v62 }
 0x21d   :  { %vm183_vm11 = vmor %vm181_vm10, %vm182_vm9 }
 0x21e   :  { %v177_v1 = vmul.f32 %v1530_v62, %v176_v0  ;;  %v174_v2 = vsel %vm173_vm8, %v1528_v56, %v170_v63 }
 0x21f   :  { %v185_v5 = vmul.f32 %v174_v2, %v151_v41  ;;  %v194_v41 = vcvt.s32.f32 %v193_v40 }
 0x220   :  { %v178_v3 = vmul.f32 0.5, %v177_v1 }
 0x221   :  { %v188_v10 = vmul.f32 %v1507_v6, %v185_v5  ;;  %v195_v42 = vsub.f32 1.0, %v194_v41 }
 0x222   :  { %v179_v4 = vsub.f32 1.5, %v178_v3 }
 0x223   :  { %v1735_v14 = vadd.f32 %v1508_v11, %v188_v10  ;;  %v196_v43 = vmul.f32 -10000.0, %v195_v42 }
 0x224   :  { %v180_v7 = vmul.f32 %v1530_v62, %v179_v4 }
 0x225   :  { %v1764_v44 = vperm.slane %v196_v43, 0  ;;  %v198_v48 = vrot.slane %v196_v43, 1 }
 0x226   :  { %v184_v8 = vsel %vm183_vm11, %v1530_v62, %v180_v7 }
 0x227   :  { %v186_v9 = vmul.f32 %v184_v8, %v152_v46  ;;  %v1768_v50 = vperm.slane %v198_v48, 0 }
 0x229   :  { %v189_v12 = vmul.f32 %v1507_v6, %v186_v9 }
 0x22b   :  { %v1737_v16 = vadd.f32 %v1508_v11, %v189_v12 }
 0x22d   :  { %v203_v17 = vpack.c.bf16 %v1737_v16, %v1735_v14 }
 0x22f   :  { %1356 = vmatmul.msk.bf16.vlgmr.msra.gmra.mxu1 %vm135_vm4, %v203_v17 }
 0x2ac   :  { %v234_v19 = vpop.f32.mrf.mxu1 }
 0x2ad   :  { %v235_v20 = vadd.f32 %v1509_v18, %v234_v19 }
 0x2af   :  { %v239_v21 = vpack.c.bf16 %v235_v20, %v235_v20 }
 0x2b1   :  { %v242_v22 = vunpack.c.l.b16 %v239_v21 }
 0x2b3   :  { %v1742_v23 = vpack.c.b16 %v242_v22, %v242_v22 }
 0x2b4   :  { %v236_v24 = vpop.f32.mrf.mxu1 }
 0x2b5   :  { %v237_v25 = vadd.f32 %v1509_v18, %v236_v24  ;;  %364 = vrot.lane.b32.xlu2 %v1742_v23, %s1671_s0  ;;  %244 = vrot.lane.b32.xlu1 %v1742_v23, %s1672_s7 }
 0x2b7   :  { %v240_v26 = vpack.c.bf16 %v237_v25, %v237_v25 }
 0x2b9   :  { %v267_v27 = vunpack.c.l.b16 %v240_v26 }
 0x2bb   :  { %v268_v28 = vpack.c.b16 %v267_v27, %v267_v27 }
 0x2bd   :  { %269 = vrot.lane.b32.xlu0 %v268_v28, %s1672_s7 }
 0x2c5   :  { %362 = vrot.lane.b32.xlu0 %v1742_v23, %s1673_s8 }
 0x2cd   :  { %387 = vrot.lane.b32.xlu0 %v268_v28, %s1671_s0 }
 0x2d5   :  { %385 = vrot.lane.b32.xlu0 %v268_v28, %s1673_s8 }
 0x30f   :  { %v365_v31 = vpop.permute.xlu2 %364 }
 0x310   :  { %v370_v34 = vsel %vm246_vm12, %v365_v31, 0 }
 0x327   :  { %v245_v29 = vpop.permute.xlu1 %244 }
 0x328   :  { %v251_v30 = vsel %vm246_vm12, %v245_v29, 0 }
 0x329   :  { %260 = vmatpush.bf16.xpose.msra.mxu2 %v251_v30 }
 0x32f   :  { %v270_v32 = vpop.permute.xlu0 %269 }
 0x330   :  { %1357 = vmatmul.msk.bf16.vlgmr.msra.gmra.mxu2 %vm246_vm12, %v239_v21  ;;  %v275_v33 = vsel %vm246_vm12, %v270_v32, 0 }
 0x331   :  { %284 = vmatpush.bf16.xpose.msra.mxu3 %v275_v33 }
 0x337   :  { %v363_v35 = vpop.permute.xlu0 %362 }
 0x338   :  { %1358 = vmatmul.msk.bf16.vlgmr.msra.gmra.mxu3 %vm246_vm12, %v240_v26 }
 0x339   :  { %379 = vmatpush.bf16.xpose.msrb.mxu3 %v370_v34 }
 0x33f   :  { %v388_v36 = vpop.permute.xlu0 %387 }
 0x340   :  { %v393_v37 = vsel %vm246_vm12, %v388_v36, 0 }
 0x341   :  { %402 = vmatpush.bf16.xpose.msrb.mxu0 %v393_v37 }
 0x347   :  { %v386_v39 = vpop.permute.xlu0 %385 }
 0x348   :  { %1361 = vmatmul.msk.bf16.vlgmr.msrb.gmra.mxu3 %vm246_vm12, %v363_v35  ;;  %1362 = vmatmul.msk.bf16.vlgmr.msrb.gmra.mxu0 %vm246_vm12, %v386_v39 }
 0x3b3   :  { %v262_v45 = vpop.f32.mrf.mxu2 }
 0x3b4   :  { %v290_v46 = vmul.f32 0.25, %v262_v45 }
 0x3b6   :  { %v292_v47 = vadd.f32 %v290_v46, %v1764_v44 }
 0x3b8   :  { %v295_v49 = vsel %vm294_vm13, %v292_v47, -inf }
 0x3b9   :  { %296 = vmax.xlane.f32.xlu1 %v295_v49 }
 0x3bb   :  { %v264_v51 = vpop.f32.mrf.mxu2  ;;  %v286_v52 = vpop.f32.mrf.mxu3 }
 0x3bc   :  { %v291_v53 = vmul.f32 0.25, %v286_v52 }
 0x3be   :  { %v293_v54 = vadd.f32 %v291_v53, %v1768_v50 }
 0x3c0   :  { %v298_v55 = vsel %vm294_vm13, %v293_v54, -inf }
 0x3c1   :  { %299 = vmax.xlane.f32.xlu2 %v298_v55  ;;  %v1458_v55 = vld [vmem:[#allocation2 + $0x40] sm:$0xff] }
 0x3c2   :  { %516 = vmatpush.bf16.msra.mxu3 %v1458_v55  ;;  %v1512_v55 = vld [vmem:[#allocation5 + $0x28] ss:$0 sm:$0xff] }
 0x3c3   :  { %v288_v56 = vpop.f32.mrf.mxu3 }
 0x3c5   :  { %v404_v57 = vpop.f32.mrf.mxu0 }
 0x3c6   :  { %v409_v58 = vmul.f32 0.25, %v404_v57 }
 0x3c8   :  { %v411_v59 = vadd.f32 %v409_v58, %v1768_v50 }
 0x3ca   :  { %v415_v60 = vsel %vm294_vm13, %v411_v59, -inf }
 0x3cb   :  { %416 = vmax.xlane.f32.xlu0 %v415_v60  ;;  %v381_v61 = vpop.f32.mrf.mxu3 }
 0x3cc   :  { %v408_v62 = vmul.f32 0.25, %v381_v61 }
 0x3cd   :  { %v406_v63 = vpop.f32.mrf.mxu0 }
 0x3ce   :  { %v410_v0 = vadd.f32 %v408_v62, %v1764_v44 }
 0x3d0   :  { %v412_v1 = vsel %vm294_vm13, %v410_v0, -inf }
 0x3d1   :  { %413 = vmax.xlane.f32.xlu2 %v412_v1 }
 0x3d3   :  { %v383_v2 = vpop.f32.mrf.mxu3 }
 0x3df   :  { %341 = vrot.lane.b32.xlu0 %v268_v28, %s1664_s26 }
 0x3e7   :  { %457 = vrot.lane.b32.xlu0 %v268_v28, %s1674_s1 }
 0x42c   :  { %v297_v3 = vpop.xlane.xlu1 %296 }
 0x42d   :  { %v301_v4 = vsub.f32 %v292_v47, %v297_v3 }
 0x42f   :  { %v303_v5 = vmul.f32 1.442695, %v301_v4 }
 0x431   :  { %1531 = vpow2.f32 %v303_v5 }
 0x434   :  { %v300_v6 = vpop.xlane.xlu2 %299 }
 0x435   :  { %v302_v7 = vsub.f32 %v293_v54, %v300_v6 }
 0x437   :  { %v1532_v8 = vpop.eup %1531  ;;  %v305_v9 = vmul.f32 1.442695, %v302_v7  ;;  %v1510_v7 = vld [vmem:[#allocation5 + $0x18] ss:$0 sm:$0xff] }
 0x438   :  { %v307_v10 = vsel %vm294_vm13, %v1532_v8, 0.0 }
 0x439   :  { %1533 = vpow2.f32 %v305_v9  ;;  %308 = vadd.xlane.f32.xlu2 %v307_v10 }
 0x43e   :  { %v417_v11 = vpop.xlane.xlu0 %416 }
 0x43f   :  { %v1534_v12 = vpop.eup %1533  ;;  %v419_v17 = vsub.f32 %v411_v59, %v417_v11 }
 0x440   :  { %v310_v18 = vsel %vm294_vm13, %v1534_v12, 0.0 }
 0x441   :  { %v422_v19 = vmul.f32 1.442695, %v419_v17  ;;  %311 = vadd.xlane.f32.xlu1 %v310_v18 }
 0x443   :  { %1535 = vpow2.f32 %v422_v19 }
 0x444   :  { %v414_v20 = vpop.xlane.xlu2 %413 }
 0x445   :  { %v418_v21 = vsub.f32 %v410_v0, %v414_v20  ;;  %v1457_v0 = vld [vmem:[#allocation2 + $0x38] sm:$0xff] }
 0x446   :  { %517 = vmatpush.bf16.msra.mxu3 %v1457_v0  ;;  %v1462_v0 = vld [vmem:[#allocation2 + $0x60] sm:$0xff] }
 0x447   :  { %v420_v22 = vmul.f32 1.442695, %v418_v21 }
 0x449   :  { %v1536_v24 = vpop.eup %1535  ;;  %1537 = vpow2.f32 %v420_v22 }
 0x44a   :  { %v427_v25 = vsel %vm294_vm13, %v1536_v24, 0.0 }
 0x44b   :  { %428 = vadd.xlane.f32.xlu2 %v427_v25 }
 0x44f   :  { %v1538_v26 = vpop.eup %1537 }
 0x450   :  { %v424_v29 = vsel %vm294_vm13, %v1538_v26, 0.0 }
 0x451   :  { %v342_v27 = vpop.permute.xlu0 %341 }
 0x452   :  { %v347_v28 = vsel %vm324_vm14, %v342_v27, 0 }
 0x453   :  { %356 = vmatpush.bf16.msrb.mxu2 %v347_v28  ;;  %425 = vadd.xlane.f32.xlu2 %v424_v29 }
 0x459   :  { %v458_v30 = vpop.permute.xlu0 %457 }
 0x45a   :  { %v463_v31 = vsel %vm324_vm14, %v458_v30, 0  ;;  %319 = vrot.lane.b32.xlu1 %v1742_v23, %s1664_s26 }
 0x45b   :  { %472 = vmatpush.bf16.msra.mxu2 %v463_v31 }
 0x46b   :  { %436 = vrot.lane.b32.xlu2 %v1742_v23, %s1674_s1 }
 0x4ac   :  { %v309_v33 = vpop.xlane.xlu2 %308 }
 0x4b4   :  { %v312_v32 = vpop.xlane.xlu1 %311 }
 0x4b5   :  { %1539 = vrcp.f32 %v312_v32  ;;  %v1459_v32 = vld [vmem:[#allocation2 + $0x48] sm:$0xff] }
 0x4bb   :  { %v1540_v34 = vpop.eup %1539 }
 0x4bc   :  { %v316_v35 = vmul.f32 %v1540_v34, %v1534_v12 }
 0x4be   :  { %v429_v36 = vpop.xlane.xlu2 %428  ;;  %v318_v37 = vpack.c.bf16 %v316_v35, %v316_v35 }
 0x4bf   :  { %1541 = vrcp.f32 %v429_v36 }
 0x4c0   :  { %1360 = vmatmul.msk.bf16.vlgmr.msrb.gmra.mxu2 %vm294_vm13, %v318_v37  ;;  %1543 = vrcp.f32 %v309_v33 }
 0x4c5   :  { %v1542_v40 = vpop.eup %1541 }
 0x4c6   :  { %v426_v39 = vpop.xlane.xlu2 %425  ;;  %v1544_v41 = vpop.eup %1543  ;;  %v433_v42 = vmul.f32 %v1542_v40, %v1536_v24 }
 0x4c7   :  { %v315_v43 = vmul.f32 %v1544_v41, %v1532_v8  ;;  %1545 = vrcp.f32 %v426_v39 }
 0x4c8   :  { %v435_v23 = vpack.c.bf16 %v433_v42, %v433_v42 }
 0x4c9   :  { %v317_v49 = vpack.c.bf16 %v315_v43, %v315_v43 }
 0x4cc   :  { %v320_v45 = vpop.permute.xlu1 %319 }
 0x4cd   :  { %v326_v46 = vsel %vm324_vm14, %v320_v45, 0  ;;  %v1546_v51 = vpop.eup %1545 }
 0x4ce   :  { %v437_v47 = vpop.permute.xlu2 %436  ;;  %335 = vmatpush.bf16.msrb.mxu1 %v326_v46  ;;  %v432_v52 = vmul.f32 %v1546_v51, %v1538_v26  ;;  %v1511_v51 = vld [vmem:[#allocation5 + $0x20] ss:$0 sm:$0xff] }
 0x4cf   :  { %v442_v48 = vsel %vm324_vm14, %v437_v47, 0 }
 0x4d0   :  { %1364 = vmatmul.msk.bf16.vlgmr.msra.gmra.mxu2 %vm294_vm13, %v435_v23  ;;  %v434_v53 = vpack.c.bf16 %v432_v52, %v432_v52 }
 0x4d1   :  { %1359 = vmatmul.msk.bf16.vlgmr.msrb.gmra.mxu1 %vm294_vm13, %v317_v49 }
 0x4d2   :  { %451 = vmatpush.bf16.msra.mxu1 %v442_v48 }
 0x4e1   :  { %1363 = vmatmul.msk.bf16.vlgmr.msra.gmra.mxu1 %vm294_vm13, %v434_v53 }
 0x543   :  { %v358_v54 = vpop.f32.mrf.mxu2 }
 0x54b   :  { %v360_v56 = vpop.f32.mrf.mxu2 }
 0x54e   :  { %v337_v57 = vpop.f32.mrf.mxu1 }
 0x553   :  { %v474_v58 = vpop.f32.mrf.mxu2 }
 0x556   :  { %v339_v59 = vpop.f32.mrf.mxu1 }
 0x55b   :  { %v476_v60 = vpop.f32.mrf.mxu2 }
 0x55e   :  { %v453_v61 = vpop.f32.mrf.mxu1 }
 0x55f   :  { %v1491_v62 = vpack.i.bf16 %v474_v58, %v453_v61 }
 0x561   :  { %1492 = vrot.lane.b32.xlu1 %v1491_v62, %s1675_s11  ;;  %v1464_v62 = vld [vmem:[#allocation2 + $0x70] sm:$0xff] }
 0x562   :  { %675 = vmatpush.bf16.msrb.mxu1 %v1464_v62 }
 0x566   :  { %v455_v63 = vpop.f32.mrf.mxu1 }
 0x567   :  { %v1463_v63 = vld [vmem:[#allocation2 + $0x68] sm:$0xff] }
 0x568   :  { %676 = vmatpush.bf16.msrb.mxu1 %v1463_v63 }
 0x56c   :  { %677 = vmatpush.bf16.msrb.mxu1 %v1462_v0 }
 0x5d3   :  { %v1493_v1 = vpop.permute.xlu1 %1492 }
 0x5d4   :  { %v1495_v2 = vunpack.i.h.bf16 %v1493_v1  ;;  %v1494_v3 = vunpack.i.l.bf16 %v1493_v1  ;;  %v1461_v1 = vld [vmem:[#allocation2 + $0x58] sm:$0xff] }
 0x5d5   :  { %678 = vmatpush.bf16.msrb.mxu1 %v1461_v1 }
 0x5d6   :  { %v487_v4 = vsel %vm246_vm12, %v358_v54, %v1495_v2  ;;  %v486_v5 = vsel %vm246_vm12, %v337_v57, %v1494_v3  ;;  %v1513_v2 = vld [vmem:[#allocation5 + $0x30] ss:$0 sm:$0xff] }
 0x5d7   :  { %v488_v6 = vpack.c.bf16 %v487_v4, %v486_v5 }
 0x5d9   :  { %1373 = vmatmul.msk.bf16.vlgmr.msra.gmra.mxu3 %vm135_vm4, %v488_v6 }
 0x65c   :  { %v519_v8 = vpop.f32.mrf.mxu3 }
 0x65d   :  { %v520_v9 = vadd.f32 %v1510_v7, %v519_v8 }
 0x65f   :  { %v524_v10 = vadd.f32 %v520_v9, %v1735_v14 }
 0x661   :  { %v528_v11 = vsel %vm135_vm4, %v524_v10, 0.0 }
 0x662   :  { %529 = vadd.xlane.f32.xlu0 %v528_v11 }
 0x664   :  { %v521_v12 = vpop.f32.mrf.mxu3 }
 0x665   :  { %v522_v17 = vadd.f32 %v1510_v7, %v521_v12 }
 0x667   :  { %v525_v18 = vadd.f32 %v522_v17, %v1737_v16  ;;  %v1460_v16 = vld [vmem:[#allocation2 + $0x50] sm:$0xff] }
 0x668   :  { %606 = vmatpush.bf16.msra.mxu0 %v1460_v16  ;;  %v1514_v16 = vld [vmem:[#allocation5 + $0x38] ss:$0 sm:$0xff] }
 0x669   :  { %v531_v19 = vsel %vm135_vm4, %v525_v18, 0.0 }
 0x66a   :  { %532 = vadd.xlane.f32.xlu1 %v531_v19 }
 0x66c   :  { %607 = vmatpush.bf16.msra.mxu0 %v1459_v32 }
 0x6d5   :  { %v530_v20 = vpop.xlane.xlu0 %529 }
 0x6d6   :  { %v534_v21 = vmul.f32 %v530_v20, %v1727_v38 }
 0x6d8   :  { %v536_v22 = vsub.f32 %v524_v10, %v534_v21 }
 0x6da   :  { %v538_v24 = vmul.f32 %v536_v22, %v536_v22 }
 0x6dc   :  { %v540_v25 = vsel %vm135_vm4, %v538_v24, 0.0 }
 0x6dd   :  { %v533_v26 = vpop.xlane.xlu1 %532  ;;  %541 = vadd.xlane.f32.xlu2 %v540_v25 }
 0x6de   :  { %v535_v14 = vmul.f32 %v533_v26, %v1727_v38 }
 0x6e0   :  { %v537_v27 = vsub.f32 %v525_v18, %v535_v14 }
 0x6e2   :  { %v539_v28 = vmul.f32 %v537_v27, %v537_v27 }
 0x6e4   :  { %v543_v29 = vsel %vm135_vm4, %v539_v28, 0.0 }
 0x6e5   :  { %544 = vadd.xlane.f32.xlu0 %v543_v29 }
 0x750   :  { %v542_v30 = vpop.xlane.xlu2 %541 }
 0x751   :  { %v546_v31 = vmul.f32 %v542_v30, %v1727_v38 }
 0x753   :  { %v548_v33 = vadd.f32 1e-12, %v546_v31 }
 0x755   :  { %1547 = vrsqrt.f32 %v548_v33  ;;  %vm556_vm0 = vweird.f32 %v548_v33 }
 0x758   :  { %v545_v34 = vpop.xlane.xlu0 %544 }
 0x759   :  { %v547_v35 = vmul.f32 %v545_v34, %v1727_v38 }
 0x75b   :  { %v1548_v36 = vpop.eup %1547  ;;  %v549_v37 = vadd.f32 1e-12, %v547_v35 }
 0x75c   :  { %v551_v39 = vmul.f32 %v1548_v36, %v548_v33  ;;  %vm557_vm15 = vweird.f32 %v1548_v36 }
 0x75d   :  { %1549 = vrsqrt.f32 %v549_v37  ;;  %vm558_vm1 = vmor %vm556_vm0, %vm557_vm15  ;;  %vm566_vm3 = vweird.f32 %v549_v37 }
 0x75e   :  { %v552_v40 = vmul.f32 %v1548_v36, %v551_v39 }
 0x760   :  { %v553_v41 = vmul.f32 0.5, %v552_v40 }
 0x762   :  { %v554_v42 = vsub.f32 1.5, %v553_v41 }
 0x763   :  { %v1550_v43 = vpop.eup %1549 }
 0x764   :  { %v555_v45 = vmul.f32 %v1548_v36, %v554_v42  ;;  %v561_v46 = vmul.f32 %v1550_v43, %v549_v37  ;;  %vm567_vm2 = vweird.f32 %v1550_v43 }
 0x765   :  { %vm568_vm5 = vmor %vm566_vm3, %vm567_vm2 }
 0x766   :  { %v562_v23 = vmul.f32 %v1550_v43, %v561_v46  ;;  %v559_v47 = vsel %vm558_vm1, %v1548_v36, %v555_v45 }
 0x767   :  { %v570_v52 = vmul.f32 %v559_v47, %v536_v22 }
 0x768   :  { %v563_v48 = vmul.f32 0.5, %v562_v23 }
 0x769   :  { %v573_v56 = vmul.f32 %v1511_v51, %v570_v52 }
 0x76a   :  { %v564_v49 = vsub.f32 1.5, %v563_v48 }
 0x76b   :  { %v576_v59 = vadd.f32 %v1512_v55, %v573_v56 }
 0x76c   :  { %v565_v53 = vmul.f32 %v1550_v43, %v564_v49  ;;  %v1466_v49 = vld [vmem:[#allocation2 + $0x80] sm:$0xff] }
 0x76d   :  { %767 = vmatpush.bf16.msrb.mxu2 %v1466_v49 }
 0x76e   :  { %v569_v54 = vsel %vm568_vm5, %v1550_v43, %v565_v53  ;;  %v1465_v53 = vld [vmem:[#allocation2 + $0x78] sm:$0xff] }
 0x76f   :  { %v571_v57 = vmul.f32 %v569_v54, %v537_v27 }
 0x771   :  { %v574_v58 = vmul.f32 %v1511_v51, %v571_v57  ;;  %768 = vmatpush.bf16.msrb.mxu2 %v1465_v53 }
 0x773   :  { %v577_v60 = vadd.f32 %v1512_v55, %v574_v58 }
 0x775   :  { %v578_v61 = vpack.c.bf16 %v577_v60, %v576_v59 }
 0x777   :  { %1382 = vmatmul.msk.bf16.vlgmr.msra.gmra.mxu0 %vm135_vm4, %v578_v61 }
 0x7f4   :  { %v609_v3 = vpop.f32.mrf.mxu0 }
 0x7f5   :  { %v610_v4 = vadd.f32 %v1513_v2, %v609_v3 }
 0x7f7   :  { %v616_v5 = vmul.f32 0.044715, %v610_v4  ;;  %v614_v25 = vmul.f32 0.5, %v610_v4 }
 0x7f9   :  { %v618_v6 = vmul.f32 %v616_v5, %v610_v4 }
 0x7fb   :  { %v620_v7 = vmul.f32 %v618_v6, %v610_v4  ;;  %v1515_v6 = vld [vmem:[#allocation5 + $0x40] ss:$0 sm:$0xff] }
 0x7fc   :  { %v611_v8 = vpop.f32.mrf.mxu0 }
 0x7fd   :  { %v622_v9 = vadd.f32 %v620_v7, %v610_v4  ;;  %v612_v10 = vadd.f32 %v1513_v2, %v611_v8 }
 0x7ff   :  { %v617_v11 = vmul.f32 0.044715, %v612_v10  ;;  %v624_v12 = vmul.f32 0.7978846, %v622_v9  ;;  %v615_v26 = vmul.f32 0.5, %v612_v10 }
 0x801   :  { %v619_v17 = vmul.f32 %v617_v11, %v612_v10  ;;  %1551 = vtanh.f32 %v624_v12 }
 0x803   :  { %v621_v18 = vmul.f32 %v619_v17, %v612_v10 }
 0x805   :  { %v623_v19 = vadd.f32 %v621_v18, %v612_v10  ;;  %v1516_v10 = vld [vmem:[#allocation5 + $0x48] ss:$0 sm:$0xff] }
 0x807   :  { %v625_v20 = vmul.f32 0.7978846, %v623_v19  ;;  %v1552_v21 = vpop.eup %1551 }
 0x808   :  { %v628_v22 = vadd.f32 1.0, %v1552_v21  ;;  %v1517_v21 = vld [vmem:[#allocation5 + $0x50] ss:$0 sm:$0xff] }
 0x809   :  { %1553 = vtanh.f32 %v625_v20 }
 0x80a   :  { %v630_v27 = vmul.f32 %v628_v22, %v614_v25 }
 0x80f   :  { %v1554_v24 = vpop.eup %1553 }
 0x810   :  { %v629_v14 = vadd.f32 1.0, %v1554_v24 }
 0x812   :  { %v631_v28 = vmul.f32 %v629_v14, %v615_v26 }
 0x814   :  { %v632_v29 = vpack.c.bf16 %v631_v28, %v630_v27 }
 0x816   :  { %1399 = vmatmul.msk.bf16.vlgmr.msrb.gmra.mxu1 %vm667_vm6, %v632_v29 }
 0x893   :  { %v680_v30 = vpop.f32.mrf.mxu1 }
 0x894   :  { %v681_v31 = vadd.f32 %v1514_v16, %v680_v30 }
 0x896   :  { %v685_v32 = vadd.f32 %v681_v31, %v576_v59 }
 0x898   :  { %v689_v33 = vsel %vm135_vm4, %v685_v32, 0.0 }
 0x899   :  { %690 = vadd.xlane.f32.xlu1 %v689_v33 }
 0x89b   :  { %v682_v34 = vpop.f32.mrf.mxu1 }
 0x89c   :  { %v683_v35 = vadd.f32 %v1514_v16, %v682_v34 }
 0x89e   :  { %v686_v36 = vadd.f32 %v683_v35, %v577_v60 }
 0x8a0   :  { %v692_v37 = vsel %vm135_vm4, %v686_v36, 0.0 }
 0x8a1   :  { %693 = vadd.xlane.f32.xlu0 %v692_v37 }
 0x90c   :  { %v691_v39 = vpop.xlane.xlu1 %690 }
 0x90d   :  { %v695_v40 = vmul.f32 %v691_v39, %v1727_v38 }
 0x90f   :  { %v697_v41 = vsub.f32 %v685_v32, %v695_v40 }
 0x911   :  { %v699_v42 = vmul.f32 %v697_v41, %v697_v41 }
 0x913   :  { %v701_v43 = vsel %vm135_vm4, %v699_v42, 0.0 }
 0x914   :  { %v694_v45 = vpop.xlane.xlu0 %693  ;;  %702 = vadd.xlane.f32.xlu1 %v701_v43 }
 0x915   :  { %v696_v46 = vmul.f32 %v694_v45, %v1727_v38 }
 0x917   :  { %v698_v23 = vsub.f32 %v686_v36, %v696_v46 }
 0x919   :  { %v700_v47 = vmul.f32 %v698_v23, %v698_v23 }
 0x91b   :  { %v704_v48 = vsel %vm135_vm4, %v700_v47, 0.0 }
 0x91c   :  { %705 = vadd.xlane.f32.xlu0 %v704_v48 }
 0x987   :  { %v703_v51 = vpop.xlane.xlu1 %702 }
 0x988   :  { %v707_v52 = vmul.f32 %v703_v51, %v1727_v38 }
 0x98a   :  { %v709_v54 = vadd.f32 1e-12, %v707_v52 }
 0x98c   :  { %1555 = vrsqrt.f32 %v709_v54  ;;  %vm717_vm8 = vweird.f32 %v709_v54 }
 0x98f   :  { %v706_v55 = vpop.xlane.xlu0 %705 }
 0x990   :  { %v708_v56 = vmul.f32 %v706_v55, %v1727_v38 }
 0x992   :  { %v1556_v57 = vpop.eup %1555  ;;  %v710_v58 = vadd.f32 1e-12, %v708_v56 }
 0x993   :  { %v712_v59 = vmul.f32 %v1556_v57, %v709_v54  ;;  %vm718_vm7 = vweird.f32 %v1556_v57 }
 0x994   :  { %1557 = vrsqrt.f32 %v710_v58  ;;  %vm719_vm9 = vmor %vm717_vm8, %vm718_vm7  ;;  %vm727_vm11 = vweird.f32 %v710_v58  ;;  %vm1266_vm8 = vcmask 254976  }
 0x995   :  { %v713_v60 = vmul.f32 %v1556_v57, %v712_v59 }
 0x997   :  { %v714_v61 = vmul.f32 0.5, %v713_v60 }
 0x999   :  { %v715_v62 = vsub.f32 1.5, %v714_v61 }
 0x99a   :  { %v1558_v63 = vpop.eup %1557 }
 0x99b   :  { %v716_v0 = vmul.f32 %v1556_v57, %v715_v62  ;;  %v722_v1 = vmul.f32 %v1558_v63, %v710_v58  ;;  %vm728_vm10 = vweird.f32 %v1558_v63 }
 0x99c   :  { %vm729_vm15 = vmor %vm727_vm11, %vm728_vm10 }
 0x99d   :  { %v723_v2 = vmul.f32 %v1558_v63, %v722_v1  ;;  %v720_v3 = vsel %vm719_vm9, %v1556_v57, %v716_v0 }
 0x99e   :  { %v731_v7 = vmul.f32 %v720_v3, %v697_v41 }
 0x99f   :  { %v724_v4 = vmul.f32 0.5, %v723_v2 }
 0x9a0   :  { %v734_v11 = vmul.f32 %v1515_v6, %v731_v7 }
 0x9a1   :  { %v725_v5 = vsub.f32 1.5, %v724_v4 }
 0x9a2   :  { %v1818_v18 = vadd.f32 %v1516_v10, %v734_v11 }
 0x9a3   :  { %v726_v8 = vmul.f32 %v1558_v63, %v725_v5 }
 0x9a5   :  { %v730_v9 = vsel %vm729_vm15, %v1558_v63, %v726_v8 }
 0x9a6   :  { %v732_v12 = vmul.f32 %v730_v9, %v698_v23 }
 0x9a8   :  { %v735_v17 = vmul.f32 %v1515_v6, %v732_v12 }
 0x9aa   :  { %v1820_v19 = vadd.f32 %v1516_v10, %v735_v17 }
 0x9ac   :  { %v739_v20 = vpack.c.bf16 %v1820_v19, %v1818_v18 }
 0x9ae   :  { %1408 = vmatmul.msk.bf16.vlgmr.msrb.gmra.mxu2 %vm135_vm4, %v739_v20 }
 0xa31   :  { %v770_v22 = vpop.f32.mrf.mxu2 }
 0xa32   :  { %v771_v24 = vadd.f32 %v1517_v21, %v770_v22 }
 0xa34   :  { %v775_v25 = vpack.c.bf16 %v771_v24, %v771_v24 }
 0xa36   :  { %v778_v26 = vunpack.c.l.b16 %v775_v25 }
 0xa38   :  { %v1825_v14 = vpack.c.b16 %v778_v26, %v778_v26 }
 0xa39   :  { %v772_v27 = vpop.f32.mrf.mxu2 }
 0xa3a   :  { %v773_v28 = vadd.f32 %v1517_v21, %v772_v27  ;;  %897 = vrot.lane.b32.xlu0 %v1825_v14, %s1671_s0  ;;  %780 = vrot.lane.b32.xlu2 %v1825_v14, %s1672_s7 }
 0xa3c   :  { %v776_v29 = vpack.c.bf16 %v773_v28, %v773_v28 }
 0xa3e   :  { %v802_v16 = vunpack.c.l.b16 %v776_v29 }
 0xa40   :  { %v1831_v30 = vpack.c.b16 %v802_v16, %v802_v16 }
 0xa42   :  { %804 = vrot.lane.b32.xlu1 %v1831_v30, %s1672_s7  ;;  %895 = vrot.lane.b32.xlu0 %v1825_v14, %s1673_s8 }
 0xa43   :  { %920 = vrot.lane.b32.xlu2 %v1831_v30, %s1671_s0 }
 0xa4a   :  { %918 = vrot.lane.b32.xlu1 %v1831_v30, %s1673_s8 }
 0xa94   :  { %v781_v31 = vpop.permute.xlu2 %780 }
 0xa95   :  { %v786_v32 = vsel %vm246_vm12, %v781_v31, 0 }
 0xa96   :  { %795 = vmatpush.bf16.xpose.msrb.mxu3 %v786_v32 }
 0xa9d   :  { %1409 = vmatmul.msk.bf16.vlgmr.msrb.gmra.mxu3 %vm246_vm12, %v775_v25  ;;  %v921_v35 = vpop.permute.xlu2 %920 }
 0xa9e   :  { %v926_v40 = vsel %vm246_vm12, %v921_v35, 0 }
 0xaac   :  { %v898_v33 = vpop.permute.xlu0 %897 }
 0xaad   :  { %v903_v34 = vsel %vm246_vm12, %v898_v33, 0 }
 0xaae   :  { %912 = vmatpush.bf16.xpose.msra.mxu3 %v903_v34 }
 0xab4   :  { %v805_v36 = vpop.permute.xlu1 %804  ;;  %v896_v37 = vpop.permute.xlu0 %895 }
 0xab5   :  { %v810_v39 = vsel %vm246_vm12, %v805_v36, 0  ;;  %1413 = vmatmul.msk.bf16.vlgmr.msra.gmra.mxu3 %vm246_vm12, %v896_v37 }
 0xab6   :  { %819 = vmatpush.bf16.xpose.msrb.mxu0 %v810_v39 }
 0xabc   :  { %v919_v41 = vpop.permute.xlu1 %918 }
 0xabd   :  { %1410 = vmatmul.msk.bf16.vlgmr.msrb.gmra.mxu0 %vm246_vm12, %v776_v29 }
 0xabe   :  { %935 = vmatpush.bf16.xpose.msra.mxu0 %v926_v40 }
 0xacd   :  { %1414 = vmatmul.msk.bf16.vlgmr.msra.gmra.mxu0 %vm246_vm12, %v919_v41 }
 0xb20   :  { %v797_v42 = vpop.f32.mrf.mxu3 }
 0xb21   :  { %v825_v43 = vmul.f32 0.25, %v797_v42 }
 0xb23   :  { %v827_v45 = vadd.f32 %v825_v43, %v1764_v44 }
 0xb25   :  { %v829_v46 = vsel %vm294_vm13, %v827_v45, -inf }
 0xb26   :  { %830 = vmax.xlane.f32.xlu0 %v829_v46 }
 0xb28   :  { %v799_v23 = vpop.f32.mrf.mxu3 }
 0xb38   :  { %v914_v47 = vpop.f32.mrf.mxu3 }
 0xb39   :  { %v941_v52 = vmul.f32 0.25, %v914_v47 }
 0xb3a   :  { %v821_v48 = vpop.f32.mrf.mxu0  ;;  %853 = vrot.lane.b32.xlu0 %v1825_v14, %s1664_s26 }
 0xb3b   :  { %v826_v49 = vmul.f32 0.25, %v821_v48  ;;  %v943_v56 = vadd.f32 %v941_v52, %v1764_v44 }
 0xb3d   :  { %v828_v51 = vadd.f32 %v826_v49, %v1768_v50  ;;  %v945_v57 = vsel %vm294_vm13, %v943_v56, -inf }
 0xb3f   :  { %v832_v53 = vsel %vm294_vm13, %v828_v51, -inf }
 0xb40   :  { %833 = vmax.xlane.f32.xlu2 %v832_v53  ;;  %v916_v54 = vpop.f32.mrf.mxu3  ;;  %v1468_v53 = vld [vmem:[#allocation2 + $0x90] sm:$0xff] }
 0xb41   :  { %1049 = vmatpush.bf16.msrb.mxu3 %v1468_v53 }
 0xb42   :  { %v823_v55 = vpop.f32.mrf.mxu0 }
 0xb48   :  { %946 = vmax.xlane.f32.xlu2 %v945_v57 }
 0xb4a   :  { %v937_v58 = vpop.f32.mrf.mxu0 }
 0xb4b   :  { %v942_v59 = vmul.f32 0.25, %v937_v58  ;;  %v1467_v58 = vld [vmem:[#allocation2 + $0x88] sm:$0xff] }
 0xb4c   :  { %1050 = vmatpush.bf16.msrb.mxu3 %v1467_v58 }
 0xb4d   :  { %v944_v60 = vadd.f32 %v942_v59, %v1768_v50 }
 0xb4f   :  { %v948_v61 = vsel %vm294_vm13, %v944_v60, -inf }
 0xb50   :  { %949 = vmax.xlane.f32.xlu1 %v948_v61 }
 0xb52   :  { %v939_v62 = vpop.f32.mrf.mxu0 }
 0xb60   :  { %874 = vrot.lane.b32.xlu2 %v1831_v30, %s1664_s26 }
 0xb99   :  { %v831_v63 = vpop.xlane.xlu0 %830 }
 0xb9a   :  { %v835_v0 = vsub.f32 %v827_v45, %v831_v63 }
 0xb9c   :  { %v837_v1 = vmul.f32 1.442695, %v835_v0 }
 0xb9e   :  { %1559 = vpow2.f32 %v837_v1  ;;  %v1676_v1 = vmov 0  }
 0xb9f   :  { %1501 = vset.pattern.permute.xlu2 %v1676_v1  ;;  %v1521_v1 = vld [vmem:[#allocation5 + $0x70] ss:$0 sm:$0xff] }
 0xba4   :  { %v1560_v2 = vpop.eup %1559 }
 0xba5   :  { %v841_v44 = vsel %vm294_vm13, %v1560_v2, 0.0 }
 0xba6   :  { %842 = vadd.xlane.f32.xlu1 %v841_v44 }
 0xbac   :  { %v854_v3 = vpop.permute.xlu0 %853 }
 0xbad   :  { %v859_v4 = vsel %vm324_vm14, %v854_v3, 0 }
 0xbae   :  { %868 = vmatpush.bf16.msra.mxu1 %v859_v4 }
 0xbb3   :  { %v834_v50 = vpop.xlane.xlu2 %833 }
 0xbb4   :  { %v836_v5 = vsub.f32 %v828_v51, %v834_v50 }
 0xbb6   :  { %v839_v6 = vmul.f32 1.442695, %v836_v5 }
 0xbb8   :  { %1561 = vpow2.f32 %v839_v6 }
 0xbbb   :  { %v947_v7 = vpop.xlane.xlu2 %946 }
 0xbbc   :  { %v951_v8 = vsub.f32 %v943_v56, %v947_v7 }
 0xbbe   :  { %v1562_v9 = vpop.eup %1561  ;;  %v953_v10 = vmul.f32 1.442695, %v951_v8 }
 0xbbf   :  { %v844_v11 = vsel %vm294_vm13, %v1562_v9, 0.0 }
 0xbc0   :  { %1563 = vpow2.f32 %v953_v10  ;;  %845 = vadd.xlane.f32.xlu0 %v844_v11 }
 0xbc3   :  { %v950_v12 = vpop.xlane.xlu1 %949  ;;  %v875_v17 = vpop.permute.xlu2 %874 }
 0xbc4   :  { %v952_v20 = vsub.f32 %v944_v60, %v950_v12  ;;  %v880_v21 = vsel %vm324_vm14, %v875_v17, 0 }
 0xbc5   :  { %889 = vmatpush.bf16.msra.mxu2 %v880_v21 }
 0xbc6   :  { %v1564_v22 = vpop.eup %1563  ;;  %v955_v24 = vmul.f32 1.442695, %v952_v20 }
 0xbc7   :  { %v957_v25 = vsel %vm294_vm13, %v1564_v22, 0.0 }
 0xbc8   :  { %1565 = vpow2.f32 %v955_v24  ;;  %958 = vadd.xlane.f32.xlu1 %v957_v25 }
 0xbce   :  { %v1566_v26 = vpop.eup %1565 }
 0xbcf   :  { %v960_v27 = vsel %vm294_vm13, %v1566_v26, 0.0 }
 0xbd0   :  { %961 = vadd.xlane.f32.xlu1 %v960_v27 }
 0xbd4   :  { %969 = vrot.lane.b32.xlu0 %v1825_v14, %s1674_s1 }
 0xbe9   :  { %990 = vrot.lane.b32.xlu1 %v1831_v30, %s1674_s1 }
 0xc19   :  { %v843_v28 = vpop.xlane.xlu1 %842 }
 0xc1a   :  { %1567 = vrcp.f32 %v843_v28 }
 0xc20   :  { %v1568_v29 = vpop.eup %1567 }
 0xc21   :  { %v849_v16 = vmul.f32 %v1568_v29, %v1560_v2  ;;  %v1518_v2 = vld [vmem:[#allocation5 + $0x58] ss:$0 sm:$0xff] }
 0xc23   :  { %v851_v31 = vpack.c.bf16 %v849_v16, %v849_v16 }
 0xc25   :  { %1411 = vmatmul.msk.bf16.vlgmr.msra.gmra.mxu1 %vm294_vm13, %v851_v31 }
 0xc33   :  { %v846_v32 = vpop.xlane.xlu0 %845 }
 0xc34   :  { %1569 = vrcp.f32 %v846_v32  ;;  %v1470_v32 = vld [vmem:[#allocation2 + $0xa0] sm:$0xff] }
 0xc35   :  { %1139 = vmatpush.bf16.msrb.mxu0 %v1470_v32 }
 0xc3a   :  { %v1570_v33 = vpop.eup %1569 }
 0xc3b   :  { %v850_v34 = vmul.f32 %v1570_v33, %v1562_v9  ;;  %v959_v35 = vpop.xlane.xlu1 %958  ;;  %v1219_v9 = vld [vmem:[%s1913_s2] sm:$0x3]  ;;  %s1677_s2 = smov [#allocation7]  }
 0xc3c   :  { %1571 = vrcp.f32 %v959_v35  ;;  %s1322_s14 = sshll.u32 %s1677_s2, 4  ;;  %s1323_s14 = int_to_ptr.vmem [resolvable:$true] %s1322_s14 }
 0xc3d   :  { %v852_v36 = vpack.c.bf16 %v850_v34, %v850_v34 }
 0xc3f   :  { %1412 = vmatmul.msk.bf16.vlgmr.msra.gmra.mxu2 %vm294_vm13, %v852_v36  ;;  %v1469_v36 = vld [vmem:[#allocation2 + $0x98] sm:$0xff] }
 0xc40   :  { %1140 = vmatpush.bf16.msrb.mxu0 %v1469_v36 }
 0xc42   :  { %v1572_v14 = vpop.eup %1571 }
 0xc43   :  { %v965_v37 = vmul.f32 %v1572_v14, %v1564_v22  ;;  %v962_v41 = vpop.xlane.xlu1 %961 }
 0xc44   :  { %1573 = vrcp.f32 %v962_v41 }
 0xc45   :  { %v967_v40 = vpack.c.bf16 %v965_v37, %v965_v37 }
 0xc46   :  { %v970_v39 = vpop.permute.xlu0 %969 }
 0xc47   :  { %v975_v30 = vsel %vm324_vm14, %v970_v39, 0 }
 0xc48   :  { %984 = vmatpush.bf16.msrb.mxu1 %v975_v30 }
 0xc4a   :  { %v1574_v42 = vpop.eup %1573 }
 0xc4b   :  { %1415 = vmatmul.msk.bf16.vlgmr.msrb.gmra.mxu1 %vm294_vm13, %v967_v40  ;;  %v966_v43 = vmul.f32 %v1574_v42, %v1566_v26 }
 0xc4d   :  { %v968_v23 = vpack.c.bf16 %v966_v43, %v966_v43 }
 0xc5b   :  { %v991_v45 = vpop.permute.xlu1 %990 }
 0xc5c   :  { %v996_v46 = vsel %vm324_vm14, %v991_v45, 0 }
 0xc5d   :  { %1005 = vmatpush.bf16.msrb.mxu2 %v996_v46 }
 0xc60   :  { %1416 = vmatmul.msk.bf16.vlgmr.msrb.gmra.mxu2 %vm294_vm13, %v968_v23 }
 0xca2   :  { %v870_v47 = vpop.f32.mrf.mxu1 }
 0xcaa   :  { %v872_v48 = vpop.f32.mrf.mxu1 }
 0xcc2   :  { %v891_v49 = vpop.f32.mrf.mxu2 }
 0xcc8   :  { %v986_v51 = vpop.f32.mrf.mxu1 }
 0xcca   :  { %v893_v52 = vpop.f32.mrf.mxu2 }
 0xcd0   :  { %v988_v54 = vpop.f32.mrf.mxu1 }
 0xcd1   :  { %v1520_v54 = vld [vmem:[#allocation5 + $0x68] ss:$0 sm:$0xff] }
 0xce3   :  { %v1007_v55 = vpop.f32.mrf.mxu2 }
 0xce4   :  { %v1496_v56 = vpack.i.bf16 %v1007_v55, %v986_v51 }
 0xce6   :  { %1497 = vrot.lane.b32.xlu2 %v1496_v56, %s1675_s11 }
 0xceb   :  { %v1009_v57 = vpop.f32.mrf.mxu2 }
 0xd40   :  { %v1498_v59 = vpop.permute.xlu2 %1497 }
 0xd41   :  { %v1500_v60 = vunpack.i.h.bf16 %v1498_v59  ;;  %v1499_v61 = vunpack.i.l.bf16 %v1498_v59 }
 0xd43   :  { %v1020_v62 = vsel %vm246_vm12, %v891_v49, %v1500_v60  ;;  %v1019_v63 = vsel %vm246_vm12, %v870_v47, %v1499_v61  ;;  %vm1220_vm12 = vcmp.gt.s32.totalorder %v1219_v9, 0  ;;  %v1519_v49 = vld [vmem:[#allocation5 + $0x60] ss:$0 sm:$0xff]  ;;  %v1474_v61 = vld [vmem:[#allocation2 + $0xc0] sm:$0xff] }
 0xd44   :  { %v1021_v0 = vpack.c.bf16 %v1020_v62, %v1019_v63  ;;  %v1221_v10 = vsel %vm1220_vm12, %v1219_v9, 0  ;;  %1207 = vmatpush.bf16.msra.mxu1 %v1474_v61  ;;  %v1473_v62 = vld [vmem:[#allocation2 + $0xb8] sm:$0xff]  ;;  %v1472_v63 = vld [vmem:[#allocation2 + $0xb0] sm:$0xff] }
 0xd45   :  { %vm1222_vm13 = vcmp.lt.s32.totalorder %v1221_v10, 7 }
 0xd46   :  { %1425 = vmatmul.msk.bf16.vlgmr.msrb.gmra.mxu3 %vm135_vm4, %v1021_v0  ;;  %v1223_v11 = vsel %vm1222_vm13, %v1221_v10, 7  ;;  %v1471_v0 = vld [vmem:[#allocation2 + $0xa8] sm:$0xff] }
 0xd48   :  { %1208 = vmatpush.bf16.msra.mxu1 %v1473_v62 }
 0xd4c   :  { %1209 = vmatpush.bf16.msra.mxu1 %v1472_v63 }
 0xd50   :  { %1210 = vmatpush.bf16.msra.mxu1 %v1471_v0 }
 0xdc9   :  { %v1052_v44 = vpop.f32.mrf.mxu3 }
 0xdca   :  { %v1053_v3 = vadd.f32 %v1518_v2, %v1052_v44 }
 0xdcc   :  { %v1057_v4 = vadd.f32 %v1053_v3, %v1818_v18 }
 0xdce   :  { %v1061_v50 = vsel %vm135_vm4, %v1057_v4, 0.0 }
 0xdcf   :  { %1062 = vadd.xlane.f32.xlu0 %v1061_v50 }
 0xdd1   :  { %v1054_v5 = vpop.f32.mrf.mxu3 }
 0xdd2   :  { %v1055_v6 = vadd.f32 %v1518_v2, %v1054_v5 }
 0xdd4   :  { %v1058_v7 = vadd.f32 %v1055_v6, %v1820_v19 }
 0xdd6   :  { %v1064_v8 = vsel %vm135_vm4, %v1058_v7, 0.0 }
 0xdd7   :  { %1065 = vadd.xlane.f32.xlu2 %v1064_v8 }
 0xdef   :  { %1225 = vperm.xlu2 %1501, %v1223_v11  }
 0xe42   :  { %v1063_v18 = vpop.xlane.xlu0 %1062 }
 0xe43   :  { %v1067_v12 = vmul.f32 %v1063_v18, %v1727_v38 }
 0xe45   :  { %v1069_v17 = vsub.f32 %v1057_v4, %v1067_v12 }
 0xe47   :  { %v1071_v20 = vmul.f32 %v1069_v17, %v1069_v17 }
 0xe49   :  { %v1073_v21 = vsel %vm135_vm4, %v1071_v20, 0.0 }
 0xe4a   :  { %v1066_v19 = vpop.xlane.xlu2 %1065  ;;  %1074 = vadd.xlane.f32.xlu1 %v1073_v21 }
 0xe4b   :  { %v1068_v22 = vmul.f32 %v1066_v19, %v1727_v38 }
 0xe4d   :  { %v1070_v24 = vsub.f32 %v1058_v7, %v1068_v22 }
 0xe4f   :  { %v1072_v25 = vmul.f32 %v1070_v24, %v1070_v24 }
 0xe51   :  { %v1076_v26 = vsel %vm135_vm4, %v1072_v25, 0.0 }
 0xe52   :  { %1077 = vadd.xlane.f32.xlu0 %v1076_v26  ;;  %v1226_v27 = vpop.permute.xlu2 %1225 }
 0xe53   :  { %vm1227_vm14 = vcmp.eq.s32.totalorder %v1719_v13, %v1226_v27 }
 0xe54   :  { %v1228_v28 = vsel %vm1227_vm14, 1.0, %v1669_v15 }
 0xe55   :  { %v1229_v29 = vperm.slane %v1228_v28, 0  ;;  %v1236_v16 = vperm.slane %v1228_v28, 1  ;;  %v1522_v28 = vld [vmem:[#allocation5 + $0x78] ss:$0 sm:$0xff] }
 0xe57   :  { %v1502_v31 = vpack.i.bf16 %v1236_v16, %v1229_v29 }
 0xe66   :  { %1503 = vperm.xlu0 %1490, %v1502_v31  }
 0xebd   :  { %v1075_v33 = vpop.xlane.xlu1 %1074 }
 0xebe   :  { %v1079_v34 = vmul.f32 %v1075_v33, %v1727_v38 }
 0xec0   :  { %v1081_v35 = vadd.f32 1e-12, %v1079_v34 }
 0xec2   :  { %1575 = vrsqrt.f32 %v1081_v35  ;;  %vm1089_vm1 = vweird.f32 %v1081_v35 }
 0xec5   :  { %v1078_v14 = vpop.xlane.xlu0 %1077 }
 0xec6   :  { %v1080_v37 = vmul.f32 %v1078_v14, %v1727_v38 }
 0xec8   :  { %v1576_v39 = vpop.eup %1575  ;;  %v1082_v13 = vadd.f32 1e-12, %v1080_v37 }
 0xec9   :  { %v1084_v30 = vmul.f32 %v1576_v39, %v1081_v35  ;;  %vm1090_vm0 = vweird.f32 %v1576_v39 }
 0xeca   :  { %1577 = vrsqrt.f32 %v1082_v13  ;;  %vm1091_vm2 = vmor %vm1089_vm1, %vm1090_vm0  ;;  %vm1099_vm5 = vweird.f32 %v1082_v13 }
 0xecb   :  { %v1085_v15 = vmul.f32 %v1576_v39, %v1084_v30 }
 0xecd   :  { %v1086_v40 = vmul.f32 0.5, %v1085_v15 }
 0xecf   :  { %v1087_v41 = vsub.f32 1.5, %v1086_v40 }
 0xed0   :  { %v1578_v42 = vpop.eup %1577 }
 0xed1   :  { %v1088_v43 = vmul.f32 %v1576_v39, %v1087_v41  ;;  %v1094_v45 = vmul.f32 %v1578_v42, %v1082_v13  ;;  %vm1100_vm3 = vweird.f32 %v1578_v42 }
 0xed2   :  { %vm1101_vm7 = vmor %vm1099_vm5, %vm1100_vm3 }
 0xed3   :  { %v1095_v46 = vmul.f32 %v1578_v42, %v1094_v45  ;;  %v1092_v23 = vsel %vm1091_vm2, %v1576_v39, %v1088_v43 }
 0xed4   :  { %v1103_v51 = vmul.f32 %v1092_v23, %v1069_v17 }
 0xed5   :  { %v1096_v47 = vmul.f32 0.5, %v1095_v46 }
 0xed6   :  { %v1106_v55 = vmul.f32 %v1519_v49, %v1103_v51 }
 0xed7   :  { %v1097_v48 = vsub.f32 1.5, %v1096_v47 }
 0xed8   :  { %v1109_v58 = vadd.f32 %v1520_v54, %v1106_v55  ;;  %v1504_v29 = vpop.permute.xlu0 %1503 }
 0xed9   :  { %v1098_v52 = vmul.f32 %v1578_v42, %v1097_v48  ;;  %v1505_v32 = vunpack.i.l.bf16 %v1504_v29  ;;  %v1506_v13 = vunpack.i.h.bf16 %v1504_v29 }
 0xedb   :  { %v1102_v53 = vsel %vm1101_vm7, %v1578_v42, %v1098_v52 }
 0xedc   :  { %v1104_v56 = vmul.f32 %v1102_v53, %v1070_v24 }
 0xede   :  { %v1107_v57 = vmul.f32 %v1519_v49, %v1104_v56 }
 0xee0   :  { %v1110_v59 = vadd.f32 %v1520_v54, %v1107_v57 }
 0xee2   :  { %v1111_v60 = vpack.c.bf16 %v1110_v59, %v1109_v58 }
 0xee4   :  { %1434 = vmatmul.msk.bf16.vlgmr.msrb.gmra.mxu0 %vm135_vm4, %v1111_v60 }
 0xf61   :  { %v1142_v2 = vpop.f32.mrf.mxu0 }
 0xf62   :  { %v1143_v44 = vadd.f32 %v1521_v1, %v1142_v2 }
 0xf64   :  { %v1149_v3 = vmul.f32 0.044715, %v1143_v44  ;;  %v1147_v19 = vmul.f32 0.5, %v1143_v44 }
 0xf66   :  { %v1151_v4 = vmul.f32 %v1149_v3, %v1143_v44 }
 0xf68   :  { %v1153_v50 = vmul.f32 %v1151_v4, %v1143_v44 }
 0xf69   :  { %v1144_v5 = vpop.f32.mrf.mxu0 }
 0xf6a   :  { %v1155_v6 = vadd.f32 %v1153_v50, %v1143_v44  ;;  %v1145_v7 = vadd.f32 %v1521_v1, %v1144_v5 }
 0xf6c   :  { %v1150_v8 = vmul.f32 0.044715, %v1145_v7  ;;  %v1157_v9 = vmul.f32 0.7978846, %v1155_v6  ;;  %v1148_v22 = vmul.f32 0.5, %v1145_v7 }
 0xf6e   :  { %v1152_v10 = vmul.f32 %v1150_v8, %v1145_v7  ;;  %1579 = vtanh.f32 %v1157_v9  ;;  %v1523_v8 = vld [vmem:[#allocation5 + $0x80] ss:$0 sm:$0xff] }
 0xf70   :  { %v1154_v11 = vmul.f32 %v1152_v10, %v1145_v7 }
 0xf72   :  { %v1156_v18 = vadd.f32 %v1154_v11, %v1145_v7 }
 0xf74   :  { %v1158_v12 = vmul.f32 0.7978846, %v1156_v18  ;;  %v1580_v17 = vpop.eup %1579 }
 0xf75   :  { %v1161_v20 = vadd.f32 1.0, %v1580_v17  ;;  %v1524_v17 = vld [vmem:[#allocation5 + $0x88] ss:$0 sm:$0xff] }
 0xf76   :  { %1581 = vtanh.f32 %v1158_v12 }
 0xf77   :  { %v1163_v25 = vmul.f32 %v1161_v20, %v1147_v19 }
 0xf7c   :  { %v1582_v21 = vpop.eup %1581 }
 0xf7d   :  { %v1162_v24 = vadd.f32 1.0, %v1582_v21 }
 0xf7f   :  { %v1164_v26 = vmul.f32 %v1162_v24, %v1148_v22 }
 0xf81   :  { %v1165_v27 = vpack.c.bf16 %v1164_v26, %v1163_v25 }
 0xf83   :  { %1451 = vmatmul.msk.bf16.vlgmr.msra.gmra.mxu1 %vm667_vm6, %v1165_v27  ;;  %vm1263_vm6 = vcmask 1041409  }
0x1000   :  { %v1212_v16 = vpop.f32.mrf.mxu1 }
0x1001   :  { %v1213_v31 = vadd.f32 %v1522_v28, %v1212_v16 }
0x1003   :  { %v1217_v33 = vadd.f32 %v1213_v31, %v1109_v58 }
0x1005   :  { %v1243_v34 = vmul.f32 %v1505_v32, %v1217_v33 }
0x1007   :  { %v1245_v35 = vsel %vm135_vm4, %v1243_v34, 0.0 }
0x1008   :  { %v1246_v36 = vrot.slane %v1245_v35, 4  ;;  %v1214_v14 = vpop.f32.mrf.mxu1 }
0x1009   :  { %v1215_v37 = vadd.f32 %v1522_v28, %v1214_v14 }
0x100a   :  { %v1247_v39 = vadd.f32 %v1246_v36, %v1245_v35 }
0x100b   :  { %v1218_v30 = vadd.f32 %v1215_v37, %v1110_v59 }
0x100c   :  { %v1248_v40 = vrot.slane %v1247_v39, 2 }
0x100d   :  { %v1244_v15 = vmul.f32 %v1506_v13, %v1218_v30 }
0x100e   :  { %v1249_v45 = vadd.f32 %v1248_v40, %v1247_v39 }
0x100f   :  { %v1252_v41 = vsel %vm135_vm4, %v1244_v15, 0.0 }
0x1010   :  { %v1253_v42 = vrot.slane %v1252_v41, 4  ;;  %v1250_v23 = vrot.slane %v1249_v45, 1 }
0x1012   :  { %v1254_v43 = vadd.f32 %v1253_v42, %v1252_v41  ;;  %v1251_v49 = vadd.f32 %v1250_v23, %v1249_v45 }
0x1014   :  { %v1255_v46 = vrot.slane %v1254_v43, 2 }
0x1016   :  { %v1256_v47 = vadd.f32 %v1255_v46, %v1254_v43 }
0x1018   :  { %v1257_v48 = vrot.slane %v1256_v47, 1 }
0x101a   :  { %v1258_v51 = vadd.f32 %v1257_v48, %v1256_v47 }
0x101c   :  { %v1264_v52 = vsel %vm1263_vm6, %v1258_v51, %v1251_v49 }
0x101d   :  { %v1267_v53 = vsel %vm1266_vm8, %v1264_v52, 0.0 }
0x101e   :  { %1268 = vadd.xlane.f32.xlu1 %v1267_v53 }
0x1091   :  { %v1269_v54 = vpop.xlane.xlu1 %1268 }
0x1092   :  { %v1270_v55 = vmul.f32 %v1269_v54, %v1727_v38 }
0x1094   :  { %v1272_v56 = vrot.slane %v1270_v55, 1  ;;  %v1275_v57 = vsub.f32 %v1251_v49, %v1270_v55 }
0x1096   :  { %v1276_v58 = vsub.f32 %v1258_v51, %v1272_v56  ;;  %v1277_v60 = vmul.f32 %v1275_v57, %v1275_v57 }
0x1098   :  { %v1278_v59 = vmul.f32 %v1276_v58, %v1276_v58 }
0x109a   :  { %v1281_v61 = vrot.slane %v1278_v59, 7 }
0x109c   :  { %v1282_v62 = vsel %vm1263_vm6, %v1281_v61, %v1277_v60 }
0x109d   :  { %v1284_v63 = vsel %vm1266_vm8, %v1282_v62, 0.0 }
0x109e   :  { %1285 = vadd.xlane.f32.xlu1 %v1284_v63 }
0x1111   :  { %v1286_v0 = vpop.xlane.xlu1 %1285 }
0x1112   :  { %v1287_v1 = vmul.f32 %v1286_v0, %v1727_v38 }
0x1114   :  { %v1288_v2 = vadd.f32 1e-12, %v1287_v1 }
0x1116   :  { %1583 = vrsqrt.f32 %v1288_v2  ;;  %vm1295_vm9 = vweird.f32 %v1288_v2 }
0x111c   :  { %v1584_v44 = vpop.eup %1583 }
0x111d   :  { %v1290_v3 = vmul.f32 %v1584_v44, %v1288_v2  ;;  %vm1296_vm4 = vweird.f32 %v1584_v44 }
0x111e   :  { %vm1297_vm10 = vmor %vm1295_vm9, %vm1296_vm4 }
0x111f   :  { %v1291_v4 = vmul.f32 %v1584_v44, %v1290_v3 }
0x1121   :  { %v1292_v50 = vmul.f32 0.5, %v1291_v4 }
0x1123   :  { %v1293_v5 = vsub.f32 1.5, %v1292_v50 }
0x1125   :  { %v1294_v6 = vmul.f32 %v1584_v44, %v1293_v5 }
0x1127   :  { %v1298_v7 = vsel %vm1297_vm10, %v1584_v44, %v1294_v6 }
0x1128   :  { %v1300_v9 = vrot.slane %v1298_v7, 1  ;;  %v1303_v10 = vmul.f32 %v1298_v7, %v1275_v57 }
0x112a   :  { %v1304_v11 = vmul.f32 %v1300_v9, %v1276_v58  ;;  %v1306_v18 = vmul.f32 %v1523_v8, %v1303_v10 }
0x112c   :  { %v1307_v12 = vmul.f32 %v1523_v8, %v1304_v11  ;;  %v1309_v20 = vadd.f32 %v1524_v17, %v1306_v18 }
0x112e   :  { %v1310_v38 = vadd.f32 %v1524_v17, %v1307_v12 }
0x1130   :  { %v1313_v21 = vrot.slane %v1310_v38, 7 }
0x1132   :  { %v1314_v19 = vsel %vm1263_vm6, %v1313_v21, %v1309_v20 }
0x1133   :  { %1316 = vst.msk [vmem:[#allocation7] sm:$0x3] %vm1266_vm8, %v1314_v19 }
0x1134   :  { %1327 = dma.vmem_to_hbm [thread:$0]  %s1323_s14, 32, %s1325_s17, [#allocation4]  }
0x1135   :  { %1661 = dma.done.wait [#allocation4], 32  }
0x1136   :  { %1662 = vsyncadd [#allocation4], 4294967264 }
0x1137   :  { %1332 = vsyncpa [#allocation3], 1 }
0x1138   :  { %1333 = vsyncpa [#allocation6], 1 }
0x1139   :  { %1334 = vsyncpa [#allocation4], 1 }

</bundles_post_ra>
